<compile_context>
chip_gen: v7x
topology: tpu7x:2x2x1
jax: 0.10.0
libtpu: 0.0.40
codegen_flags: <defaults>
</compile_context>

<pallas_src>
import functools

import jax
import jax.numpy as jnp
from jax.experimental import pallas as pl
from jax.experimental.pallas import tpu as pltpu

BETA = 0.95        # snn.Leaky decay (the module's `beta`)
THRESHOLD = 1.0    # snntorch Leaky default threshold (subtract-reset mechanism)


def value_kernel(x_ref, mem_ref, w1_ref, b1_ref, w2_ref, b2_ref, wv_ref, bv_ref,
                 v_ref, mem_out_ref):
    # fc1 in full f32 (tiny K) so the carried membrane state stays faithful to
    # the PyTorch fp32 module.
    z1 = jnp.dot(x_ref[...], w1_ref[...],
                 preferred_element_type=jnp.float32) + b1_ref[...]

    # snn.Leaky step (subtract reset): reset is based on the *previous* membrane
    # state, then mem <- beta*mem + z1 - reset*threshold, spike = H(mem - thr).
    mem_prev = mem_ref[...]
    reset = jnp.where(mem_prev > THRESHOLD, 1.0, 0.0)
    mem_new = BETA * mem_prev + z1 - reset * THRESHOLD
    spk = jnp.where(mem_new > THRESHOLD, 1.0, 0.0)
    mem_out_ref[...] = mem_new
    # TODO(synk): snn.Leaky's ATan surrogate gradient is backward-only; forward
    # uses the Heaviside spike implemented above.

    # fc2 + relu on the MXU (spikes are exactly 0/1, so the bf16 cast is
    # lossless; accumulation stays f32).
    h2 = jnp.dot(spk.astype(jnp.bfloat16), w2_ref[...],
                 preferred_element_type=jnp.float32) + b2_ref[...]
    h2 = jnp.maximum(h2, 0.0)

    # Value head: VPU multiply + lane reduction -> true [tb, 1] column store.
    v_ref[...] = (jnp.sum(h2 * wv_ref[...], axis=-1, keepdims=True)
                  + bv_ref[...])


def make_params(key, input_dims, fc1_dims, fc2_dims):
    """nn.Linear-style init (uniform +/- 1/sqrt(fan_in)).

    w1 stays f32 [in, out] (feeds the carried membrane state), w2 is bf16
    [in, out] for the MXU, the value head is stored as a row vector wv [1, fc2]
    (PyTorch's (out, in) layout) with a (1, 1) bias.
    """
    ks = jax.random.split(key, 6)

    def lin(kw, kb, fan_in, fan_out):
        bound = 1.0 / (fan_in ** 0.5)
        w = jax.random.uniform(kw, (fan_in, fan_out), jnp.float32, -bound, bound)
        b = jax.random.uniform(kb, (1, fan_out), jnp.float32, -bound, bound)
        return w, b

    w1, b1 = lin(ks[0], ks[1], input_dims, fc1_dims)
    w2, b2 = lin(ks[2], ks[3], fc1_dims, fc2_dims)
    bound_v = 1.0 / (fc2_dims ** 0.5)
    wv = jax.random.uniform(ks[4], (1, fc2_dims), jnp.float32, -bound_v, bound_v)
    bv = jax.random.uniform(ks[5], (1, 1), jnp.float32, -bound_v, bound_v)

    return dict(
        w1=w1, b1=b1,                        # f32 (membrane fidelity)
        w2=w2.astype(jnp.bfloat16), b2=b2,   # bf16 weights, f32 bias/accum
        wv=wv, bv=bv,                        # f32 row vector + scalar bias
    )


def _choose_tb(batch, tb_max):
    """Pick a batch tile: big (amortize per-step overhead), multiple of 128, and
    giving >= 2 parallel grid steps when the batch allows (v7x megacore)."""
    b128 = 128 * pl.cdiv(batch, 128)
    tb = min(tb_max, b128)
    if b128 // tb < 2 and b128 >= 256:
        tb = max(128, 128 * ((b128 // 2) // 128))
    return tb


def value_forward(state, mem, params, *, tb_max=1024):
    """Returns (v [B,1], mem_new [B, fc1]); mem_new is the updated lif1 state."""
    B, input_dims = state.shape
    fc1 = params["w1"].shape[1]
    fc2 = params["w2"].shape[1]

    tb = _choose_tb(B, tb_max)
    b_pad = tb * pl.cdiv(B, tb)

    # Only materialize padded copies for a ragged batch tail; in the common case
    # (B % tb == 0) the inputs go straight to the kernel with no extra HBM pass.
    if b_pad != B:
        x = jnp.zeros((b_pad, input_dims), state.dtype).at[:B].set(state)
        m = jnp.zeros((b_pad, fc1), mem.dtype).at[:B].set(mem)
    else:
        x, m = state, mem

    grid = (b_pad // tb,)
    flops = 2 * b_pad * (input_dims * fc1 + fc1 * fc2 + fc2)
    bytes_accessed = (
        x.size * 4 + m.size * 4
        + params["w1"].size * 4 + params["w2"].size * 2 + params["wv"].size * 4
        + (params["b1"].size + params["b2"].size + params["bv"].size) * 4
        + b_pad * 4                # v output column
        + b_pad * fc1 * 4)         # mem_new writeback

    vmem = pltpu.MemorySpace.VMEM
    v_out, mem_new = pl.pallas_call(
        value_kernel,
        out_shape=(
            jax.ShapeDtypeStruct((b_pad, 1), jnp.float32),
            jax.ShapeDtypeStruct((b_pad, fc1), jnp.float32),
        ),
        grid=grid,
        in_specs=[
            pl.BlockSpec((tb, input_dims), lambda i: (i, 0), memory_space=vmem),  # state
            pl.BlockSpec((tb, fc1), lambda i: (i, 0), memory_space=vmem),         # mem1
            # Constant-index blocks below are fetched once and stay VMEM-resident
            # across grid steps (Pallas skips DMAs when the block index repeats).
            pl.BlockSpec((input_dims, fc1), lambda i: (0, 0), memory_space=vmem), # w1
            pl.BlockSpec((1, fc1), lambda i: (0, 0), memory_space=vmem),          # b1
            pl.BlockSpec((fc1, fc2), lambda i: (0, 0), memory_space=vmem),        # w2
            pl.BlockSpec((1, fc2), lambda i: (0, 0), memory_space=vmem),          # b2
            pl.BlockSpec((1, fc2), lambda i: (0, 0), memory_space=vmem),          # wv
            pl.BlockSpec((1, 1), lambda i: (0, 0), memory_space=vmem),            # bv
        ],
        out_specs=(
            pl.BlockSpec((tb, 1), lambda i: (i, 0), memory_space=vmem),
            pl.BlockSpec((tb, fc1), lambda i: (i, 0), memory_space=vmem),
        ),
        # Membrane state updated in place (mem input -> mem_new output).
        input_output_aliases={1: 1},
        compiler_params=pltpu.CompilerParams(
            dimension_semantics=("parallel",),
            # Covers tb up to ~2048 with double buffering on every generation
            # (v5e's 16 MiB scoped default is too small for big tiles) while
            # leaving headroom inside v7x's 64 MiB physical VMEM.
            vmem_limit_bytes=40 * 1024 * 1024,
        ),
        cost_estimate=pl.CostEstimate(
            flops=flops, transcendentals=0, bytes_accessed=bytes_accessed),
    )(x, m,
      params["w1"], params["b1"],
      params["w2"], params["b2"],
      params["wv"], params["bv"])
    return v_out[:B], mem_new[:B]


if __name__ == "__main__":
    B = 512            # -> tb=256, two "parallel" grid steps (v7x megacore)
    INPUT_DIMS = 16
    FC1, FC2 = 256, 256

    key = jax.random.PRNGKey(0)
    k_state, k_params = jax.random.split(key)

    state = jax.random.normal(k_state, (B, INPUT_DIMS), jnp.float32)
    params = make_params(k_params, INPUT_DIMS, FC1, FC2)
    mem1 = jnp.zeros((B, FC1), jnp.float32)   # self.mem1 = lif1.init_leaky()

    fwd = jax.jit(functools.partial(value_forward, tb_max=1024),
                  donate_argnums=(1,))        # donate mem so the alias is in place
    v, mem_new = fwd(state, mem1, params)
    jax.block_until_ready((v, mem_new))
    assert v.shape == (B, 1) and mem_new.shape == (B, FC1)

    # ---- reference check ----------------------------------------------------
    mem0 = jnp.zeros((B, FC1), jnp.float32)   # mem1 was donated; rebuild zeros
    z1 = jnp.dot(state, params["w1"], preferred_element_type=jnp.float32,
                 precision=jax.lax.Precision.HIGHEST) + params["b1"]
    reset = jnp.where(mem0 > THRESHOLD, 1.0, 0.0)
    mem_ref = BETA * mem0 + z1 - reset * THRESHOLD
    assert jnp.allclose(mem_new, mem_ref, atol=5e-3, rtol=5e-3)

    # The value head is checked from the kernel's own membrane state so that
    # ulp-level matmul differences exactly at the 1.0 spike threshold cannot
    # flip a spike and fail the test spuriously.
    spk = jnp.where(mem_new > THRESHOLD, 1.0, 0.0)
    h2 = jnp.maximum(
        jnp.dot(spk.astype(jnp.bfloat16), params["w2"],
                preferred_element_type=jnp.float32) + params["b2"], 0.0)
    v_ref = jnp.sum(h2 * params["wv"], axis=-1, keepdims=True) + params["bv"]
    assert jnp.allclose(v, v_ref, atol=2e-3, rtol=2e-3)

    # Second step: carry the membrane state forward like the stateful module.
    v2, mem2 = fwd(state, mem_new, params)
    jax.block_until_ready((v2, mem2))
    assert v2.shape == (B, 1) and mem2.shape == (B, FC1)

    print("KERNEL_OK")
</pallas_src>

<mosaic_0001>
module attributes {stable_mosaic.version = 11 : i64} {
  func.func @value_kernel(%arg0: i32, %arg1: memref<256x16xf32, #tpu.memory_space<vmem>>, %arg2: memref<256x256xf32, #tpu.memory_space<vmem>>, %arg3: memref<16x256xf32, #tpu.memory_space<vmem>>, %arg4: memref<1x256xf32, #tpu.memory_space<vmem>>, %arg5: memref<256x256xbf16, #tpu.memory_space<vmem>>, %arg6: memref<1x256xf32, #tpu.memory_space<vmem>>, %arg7: memref<1x256xf32, #tpu.memory_space<vmem>>, %arg8: memref<1x1xf32, #tpu.memory_space<vmem>>, %arg9: memref<256x1xf32, #tpu.memory_space<vmem>>, %arg10: memref<256x256xf32, #tpu.memory_space<vmem>>) attributes {dimension_semantics = [#tpu.dimension_semantics<parallel>], iteration_bounds = array<i64: 2>, scalar_prefetch = 0 : i64, scratch_operands = 0 : i64, tpu.core_type = #tpu.core_type<tc>, window_params = [{transform_indices = @transform_0, window_bounds = array<i64: 256, 16>}, {transform_indices = @transform_1, window_bounds = array<i64: 256, 256>}, {pipeline_mode = #tpu.pipeline_mode<synchronous>, transform_indices = @transform_2, window_bounds = array<i64: 16, 256>}, {pipeline_mode = #tpu.pipeline_mode<synchronous>, transform_indices = @transform_3, window_bounds = array<i64: 1, 256>}, {pipeline_mode = #tpu.pipeline_mode<synchronous>, transform_indices = @transform_4, window_bounds = array<i64: 256, 256>}, {pipeline_mode = #tpu.pipeline_mode<synchronous>, transform_indices = @transform_5, window_bounds = array<i64: 1, 256>}, {pipeline_mode = #tpu.pipeline_mode<synchronous>, transform_indices = @transform_6, window_bounds = array<i64: 1, 256>}, {pipeline_mode = #tpu.pipeline_mode<synchronous>, transform_indices = @transform_7, window_bounds = array<i64: 1, 1>}, {transform_indices = @transform_8, window_bounds = array<i64: 256, 1>}, {transform_indices = @transform_9, window_bounds = array<i64: 256, 256>}]} {
    %c0 = arith.constant 0 : index
    %c0_0 = arith.constant 0 : index
    %0 = vector.load %arg1[%c0, %c0_0] : memref<256x16xf32, #tpu.memory_space<vmem>>, vector<256x16xf32>
    %c0_1 = arith.constant 0 : index
    %c0_2 = arith.constant 0 : index
    %1 = vector.load %arg3[%c0_1, %c0_2] : memref<16x256xf32, #tpu.memory_space<vmem>>, vector<16x256xf32>
    %cst = arith.constant dense<0.000000e+00> : vector<256x256xf32>
    %2 = tpu.matmul %0, %1, %cst {dimension_numbers = #tpu.dot_dimension_numbers<[1], [0], [0], [1], [0, 0, 1, 1], [], []>} : vector<256x16xf32>, vector<16x256xf32>, vector<256x256xf32> -> vector<256x256xf32>
    %c0_3 = arith.constant 0 : index
    %c0_4 = arith.constant 0 : index
    %3 = vector.load %arg4[%c0_3, %c0_4] : memref<1x256xf32, #tpu.memory_space<vmem>>, vector<1x256xf32>
    %4 = vector.broadcast %3 : vector<1x256xf32> to vector<256x256xf32>
    %5 = arith.addf %2, %4 : vector<256x256xf32>
    %c0_5 = arith.constant 0 : index
    %c0_6 = arith.constant 0 : index
    %6 = vector.load %arg2[%c0_5, %c0_6] : memref<256x256xf32, #tpu.memory_space<vmem>>, vector<256x256xf32>
    %cst_7 = arith.constant 1.000000e+00 : f32
    %7 = vector.broadcast %cst_7 : f32 to vector<256x256xf32>
    %8 = arith.cmpf ogt, %6, %7 : vector<256x256xf32>
    %cst_8 = arith.constant 1.000000e+00 : f32
    %cst_9 = arith.constant 0.000000e+00 : f32
    %9 = vector.broadcast %cst_8 : f32 to vector<256x256xf32>
    %10 = vector.broadcast %cst_9 : f32 to vector<256x256xf32>
    %11 = arith.select %8, %9, %10 : vector<256x256xi1>, vector<256x256xf32>
    %cst_10 = arith.constant 0.949999988 : f32
    %12 = vector.broadcast %cst_10 : f32 to vector<256x256xf32>
    %13 = arith.mulf %12, %6 : vector<256x256xf32>
    %14 = arith.addf %13, %5 : vector<256x256xf32>
    %cst_11 = arith.constant 1.000000e+00 : f32
    %15 = vector.broadcast %cst_11 : f32 to vector<256x256xf32>
    %16 = arith.mulf %11, %15 : vector<256x256xf32>
    %17 = arith.subf %14, %16 : vector<256x256xf32>
    %cst_12 = arith.constant 1.000000e+00 : f32
    %18 = vector.broadcast %cst_12 : f32 to vector<256x256xf32>
    %19 = arith.cmpf ogt, %17, %18 : vector<256x256xf32>
    %cst_13 = arith.constant 1.000000e+00 : f32
    %cst_14 = arith.constant 0.000000e+00 : f32
    %20 = vector.broadcast %cst_13 : f32 to vector<256x256xf32>
    %21 = vector.broadcast %cst_14 : f32 to vector<256x256xf32>
    %22 = arith.select %19, %20, %21 : vector<256x256xi1>, vector<256x256xf32>
    %c0_15 = arith.constant 0 : index
    %c0_16 = arith.constant 0 : index
    %23 = vector.load %arg10[%c0_15, %c0_16] : memref<256x256xf32, #tpu.memory_space<vmem>>, vector<256x256xf32>
    tpu.vector_store %arg10[%c0_15, %c0_16], %17 {strides = array<i32>} : memref<256x256xf32, #tpu.memory_space<vmem>>, vector<256x256xf32>,
    %24 = arith.truncf %22 : vector<256x256xf32> to vector<256x256xbf16>
    %c0_17 = arith.constant 0 : index
    %c0_18 = arith.constant 0 : index
    %25 = vector.load %arg5[%c0_17, %c0_18] : memref<256x256xbf16, #tpu.memory_space<vmem>>, vector<256x256xbf16>
    %cst_19 = arith.constant dense<0.000000e+00> : vector<256x256xf32>
    %26 = tpu.matmul %24, %25, %cst_19 {dimension_numbers = #tpu.dot_dimension_numbers<[1], [0], [0], [1], [0, 0, 1, 1], [], []>} : vector<256x256xbf16>, vector<256x256xbf16>, vector<256x256xf32> -> vector<256x256xf32>
    %c0_20 = arith.constant 0 : index
    %c0_21 = arith.constant 0 : index
    %27 = vector.load %arg6[%c0_20, %c0_21] : memref<1x256xf32, #tpu.memory_space<vmem>>, vector<1x256xf32>
    %28 = vector.broadcast %27 : vector<1x256xf32> to vector<256x256xf32>
    %29 = arith.addf %26, %28 : vector<256x256xf32>
    %cst_22 = arith.constant 0.000000e+00 : f32
    %30 = vector.broadcast %cst_22 : f32 to vector<256x256xf32>
    %31 = arith.maximumf %29, %30 : vector<256x256xf32>
    %c0_23 = arith.constant 0 : index
    %c0_24 = arith.constant 0 : index
    %32 = vector.load %arg7[%c0_23, %c0_24] : memref<1x256xf32, #tpu.memory_space<vmem>>, vector<1x256xf32>
    %33 = vector.broadcast %32 : vector<1x256xf32> to vector<256x256xf32>
    %34 = arith.mulf %31, %33 : vector<256x256xf32>
    %cst_25 = arith.constant dense<0.000000e+00> : vector<256xf32>
    %35 = vector.multi_reduction <add>, %34, %cst_25 [1] : vector<256x256xf32> to vector<256xf32>
    %36 = vector.shape_cast %35 : vector<256xf32> to vector<256x1xf32>
    %c0_26 = arith.constant 0 : index
    %c0_27 = arith.constant 0 : index
    %37 = vector.load %arg8[%c0_26, %c0_27] : memref<1x1xf32, #tpu.memory_space<vmem>>, vector<1x1xf32>
    %38 = vector.broadcast %37 : vector<1x1xf32> to vector<256x1xf32>
    %39 = arith.addf %36, %38 : vector<256x1xf32>
    %c0_28 = arith.constant 0 : index
    %c0_29 = arith.constant 0 : index
    %40 = vector.load %arg9[%c0_28, %c0_29] : memref<256x1xf32, #tpu.memory_space<vmem>>, vector<256x1xf32>
    tpu.vector_store %arg9[%c0_28, %c0_29], %39 {strides = array<i32>} : memref<256x1xf32, #tpu.memory_space<vmem>>, vector<256x1xf32>,
    return
  }
  func.func @transform_0(%arg0: i32) -> (i32, i32) {
    %c0_i32 = arith.constant 0 : i32
    %c0_i32_0 = arith.constant 0 : i32
    return %arg0, %c0_i32 : i32, i32
  }
  func.func @transform_1(%arg0: i32) -> (i32, i32) {
    %c0_i32 = arith.constant 0 : i32
    %c0_i32_0 = arith.constant 0 : i32
    return %arg0, %c0_i32 : i32, i32
  }
  func.func @transform_2(%arg0: i32) -> (i32, i32) {
    %c0_i32 = arith.constant 0 : i32
    %c0_i32_0 = arith.constant 0 : i32
    %c0_i32_1 = arith.constant 0 : i32
    return %c0_i32, %c0_i32_0 : i32, i32
  }
  func.func @transform_3(%arg0: i32) -> (i32, i32) {
    %c0_i32 = arith.constant 0 : i32
    %c0_i32_0 = arith.constant 0 : i32
    %c0_i32_1 = arith.constant 0 : i32
    return %c0_i32, %c0_i32_0 : i32, i32
  }
  func.func @transform_4(%arg0: i32) -> (i32, i32) {
    %c0_i32 = arith.constant 0 : i32
    %c0_i32_0 = arith.constant 0 : i32
    %c0_i32_1 = arith.constant 0 : i32
    return %c0_i32, %c0_i32_0 : i32, i32
  }
  func.func @transform_5(%arg0: i32) -> (i32, i32) {
    %c0_i32 = arith.constant 0 : i32
    %c0_i32_0 = arith.constant 0 : i32
    %c0_i32_1 = arith.constant 0 : i32
    return %c0_i32, %c0_i32_0 : i32, i32
  }
  func.func @transform_6(%arg0: i32) -> (i32, i32) {
    %c0_i32 = arith.constant 0 : i32
    %c0_i32_0 = arith.constant 0 : i32
    %c0_i32_1 = arith.constant 0 : i32
    return %c0_i32, %c0_i32_0 : i32, i32
  }
  func.func @transform_7(%arg0: i32) -> (i32, i32) {
    %c0_i32 = arith.constant 0 : i32
    %c0_i32_0 = arith.constant 0 : i32
    %c0_i32_1 = arith.constant 0 : i32
    return %c0_i32, %c0_i32_0 : i32, i32
  }
  func.func @transform_8(%arg0: i32) -> (i32, i32) {
    %c0_i32 = arith.constant 0 : i32
    %c0_i32_0 = arith.constant 0 : i32
    return %arg0, %c0_i32 : i32, i32
  }
  func.func @transform_9(%arg0: i32) -> (i32, i32) {
    %c0_i32 = arith.constant 0 : i32
    %c0_i32_0 = arith.constant 0 : i32
    return %arg0, %c0_i32 : i32, i32
  }
}

</mosaic_0001>

<bundles_post_ra>
// kernel: value_forward.1
= control target key start
LH: loop header
LB: loop body
LE: loop exit
PB: predicated region body
PF: predicated region fallthrough
CT: control target
= control target key end

     0   :  { %s3755_s0 = inlined_call_operand.vmem [shape: f32[512,16], index: 0, kind: input, shape index: {}]   ;;  %s3756_s1 = inlined_call_operand.hbm [shape: f32[512,256], index: 1, kind: input, shape index: {}, may-alias: {1,9}]   ;;  %s3757_s2 = inlined_call_operand.vmem [shape: f32[16,256], index: 2, kind: input, shape index: {}]   ;;  %s3758_s3 = inlined_call_operand.vmem [shape: f32[1,256], index: 3, kind: input, shape index: {}]   ;;  %s3759_s4 = inlined_call_operand.vmem [shape: bf16[256,256], index: 4, kind: input, shape index: {}]   ;;  %s3760_s5 = inlined_call_operand.vmem [shape: f32[1,256], index: 5, kind: input, shape index: {}]   ;;  %s3761_s6 = inlined_call_operand.vmem [shape: f32[1,256], index: 6, kind: input, shape index: {}]   ;;  %s3762_s7 = inlined_call_operand.<no memory space> [shape: f32[1,1], index: 7, kind: input, shape index: {}]   ;;  %s3763_s8 = inlined_call_operand.vmem [shape: f32[512,1], index: 8, kind: output, shape index: {0}]   ;;  %s3764_s9 = inlined_call_operand.hbm [shape: f32[512,256], index: 9, kind: output, shape index: {1}, may-alias: {1,9}]  }
   0x1   :  { %3767 = sst [smem:[#allocation10_spill]] %s3756_s1  ;;  %v15_v0 = vstv %s3762_s7 }
   0x2   :  { %16 = vst [vmem:[#allocation2] sm:$0x1] %v15_v0 }
   0x3   :  { %17 = vsyncpa [#allocation4], 0 }
   0x4   :  { %19 = vsyncpa [#allocation4 + $0x1], 0 }
   0x5   :  { %20 = vsyncpa [#allocation5], 0 }
   0x6   :  { %22 = vsyncpa [#allocation5 + $0x1], 0  ;;  %s2689_s11 = smov 0   ;;  %s2691_s12 = smov 0  }
   0x7   :  { %s2693_s13 = smov 0   ;;  %s2695_s14 = smov 0  }
   0x8 LB: > { %s2710_s7 = sadd.s32 4294967295, %s2626_s14   ;;  %s2241_s15 = sadd.s32 4294967294, %s2626_s14   ;;  %s2626_s14 = sphi %s2695_s14, %s3811_s14   ;;  %s2622_s13 = sphi %s2693_s13, %s3810_s13   ;;  %s2618_s12 = sphi %s2691_s12, %s3809_s12   ;;  %s2614_s11 = sphi %s2689_s11, %s3808_s11  }
   0x9   : > { %s2714_s16 = sadd.s32 1, %s2626_s14   ;;  %s61_s17 = sadd.s32 1, %s2622_s13 }
   0xa   : > { %s58_s18 = ssub.s32 %s2626_s14, %s2714_s16  ;;  %p68_p0 = scmp.ne.s32.totalorder %s2622_s13, %s2618_s12 }
   0xb   : > { %p59_p1 = scmp.eq.s32.totalorder %s58_s18, 0  ;;  %p69_p2 = scmp.eq.s32.totalorder %s2626_s14, 0 }
   0xc   : > { %p74_p3 = scmp.ne.s32.totalorder %s2618_s12, %s2614_s11  ;;  %p75_p4 = scmp.eq.s32.totalorder %s2710_s7, 0 }
   0xd   : > { %s2726_s19 = scalar_select %p59_p1, %s2622_s13, %s61_s17  }
   0xe   : > { %p2728_p5 = por %p69_p2, %p68_p0  ;;  %p2732_p6 = por %p75_p4, %p74_p3 }
   0xf   : > { %3768 = sst [smem:[#allocation9_spill]] %s2726_s19  ;;  %p250_p7 = scmp.eq.s32.totalorder %s2710_s7, 1 }
  0x10   : > { %p256_p8 = scmp.eq.s32.totalorder %s2241_s15, 1  ;;  %p2442_p10 = scmp.lt.s32.totalorder %s2626_s14, 2 }
  0x11   : > { %p2739_p11 = por %p250_p7, %p68_p0  ;;  %s303_s24 = sand.u32 1, %s2622_s13  }
  0x12   : > { %p2743_p12 = por %p256_p8, %p74_p3  ;;  %s2391_s25 = sshll.u32 %s2626_s14, 13 }
  0x13   : > { %s3771_s22 = scalar_select %p2739_p11, 1, 0 }
  0x14   : > { %s3772_s23 = scalar_select %p2743_p12, 1, 0 }
  0x15   : > { %s2244_s26 = sshll.u32 %s303_s24, 9  ;;  %s3773_s1 = sld [smem:[#allocation10_spill]] }
  0x16   : > { %s307_s30 = scalar_lea.vmem [#allocation3], %s2244_s26  ;;  %p2756_p13 = pnand %p2442_p10, %p2728_p5 }
  0x17   : > { %s315_s10 = sshll.u32 %s307_s30, 4  ;;  %s2762_s17 = scalar_lea.sflag [#allocation4], %s303_s24  ;;  %s2760_s10 = int_to_ptr.vmem [resolvable:$true] %s315_s10 }
  0x18   : > { %p2532_p1 = pneg %p2756_p13 }
  0x1b   : > { %s2752_s29 = scalar_lea.hbm %s3773_s1, %s2391_s25  ;;  %s2535_s26 = scalar_lea.hbm %s3773_s1, 16384 }
  0x1c   : > { %s2530_s18 = scalar_lea.hbm %s2752_s29, 8192  ;;  %p2536_p4 = scmp.lt.u32.totalorder %s2752_s29, %s3773_s1 }
  0x1d   : > { %p2531_p0 = scmp.ne.s32.totalorder %s2752_s29, %s2530_s18  ;;  %p2537_p5 = scmp.lt.u32.totalorder %s2535_s26, %s2530_s18 }
  0x1e   : > { %p2539_p8 = scmp.lt.u32.totalorder %s2530_s18, %s2752_s29 }
  0x1f   : > { %p2533_p2 = pnand %p2532_p1, %p2531_p0  ;;  %p2538_p7 = por %p2537_p5, %p2536_p4 }
  0x21   : > { %p2534_p3 = pneg %p2533_p2  ;;  %p2540_p10 = por %p2539_p8, %p2538_p7 }
  0x23   : > { %p2541_p9 = pnand %p2540_p10, %p2534_p3 }
  0x25   : > { %2544 = shalt.err (!%p2541_p9)
}
  0x26   : > { %s2545_s24 = scalar_lea.vmem %s2760_s10, 8192  ;;  %s2628_s30 = smov [#allocation3]  }
  0x27   : > { %p2546_p0 = scmp.ne.s32.totalorder %s2760_s10, %s2545_s24  ;;  %s2550_s25 = sshll.u32 %s2628_s30, 4  ;;  %s2551_s25 = int_to_ptr.vmem [resolvable:$false] %s2550_s25 }
  0x28   : > { %s2552_s20 = scalar_lea.vmem %s2551_s25, 16384  ;;  %p2553_p11 = scmp.lt.s32.totalorder %s2760_s10, %s2551_s25 }
  0x29   : > { %p2548_p2 = pnand %p2546_p0, %p2532_p1  ;;  %p2554_p4 = scmp.lt.s32.totalorder %s2552_s20, %s2545_s24 }
  0x2b   : > { %p2549_p12 = pneg %p2548_p2  ;;  %p2555_p5 = por %p2554_p4, %p2553_p11 }
  0x2d   : > { %p2556_p7 = pnand %p2555_p5, %p2549_p12 }
  0x2f   : > { %2559 = shalt.err (!%p2556_p7)
}
  0x30   : > { %s2629_s18 = smov 256   ;;  %s2630_s26 = smov 16  }
  0x31   : > { %2437 = dma.hbm_to_vmem [thread:$0]  (!%p2756_p13), %s2752_s29, 8192, %s2760_s10, %s2762_s17, %s2629_s18, %s2629_s18, %s2630_s26  }
  0x32   : > { %p2248_p9 = scmp.ge.s32.totalorder %s2626_s14, 1  ;;  %p323_p1 = scmp.lt.s32.totalorder %s2626_s14, 3 }
  0x34   : > { %p324_p3 = pnand %p2248_p9, %p323_p1 }
  0x35   : > { %s2793_s27 = sand.u32 (!%p324_p3), 1, %s2618_s12  }
  0x36   : > { %327 = sbr.rel (%p324_p3) target bundleno = 783 (0x30f), region = 52  ;;  %s3766_s28 = sshll.u32 (!%p324_p3), %s2793_s27, 9 }
  0x37   : > { %s330_s24 = scalar_lea.sflag (!%p324_p3), [#allocation4], %s2793_s27  ;;  %s2799_s30 = scalar_lea.vmem (!%p324_p3), [#allocation3], %s3766_s28 }
  0x3d   : > { %2605 = dma.done.wait (%p2732_p6), %s330_s24, 8192  }
  0x3e   : > { %2607 = vsyncadd (%p2732_p6), %s330_s24, 4294959104  ;;  %s2251_s29 = sshll.u32 %s2710_s7, 5  ;;  %v2631_v1 = vmov 0.0   ;;  %v425_v2 = vld [vmem:[%s3757_s2 + $0x8] sm:$0xff]  ;;  %v427_v3 = vld [vmem:[%s3757_s2 + $0x18] sm:$0xff]  ;;  %vm440_vm0 = vcmask 130048  }
  0x3f   : > { %601 = vmatprep.mubr.f32.mxu0 %v2631_v1  ;;  %p379_p11 = scmp.lt.s32.totalorder %s2251_s29, 63  ;;  %v424_v4 = vld [vmem:[%s3757_s2] sm:$0xff]  ;;  %v2394_v5 = vpack.c.bf16 %v427_v3, %v425_v2  ;;  %v426_v6 = vld [vmem:[%s3757_s2 + $0x10] sm:$0xff]  ;;  %s2393_s1 = sshll.u32 %s2710_s7, 13 }
  0x40   : > { %v2396_v7 = vpack.c.bf16 %v426_v6, %v424_v4  ;;  %v2482_v11 = vld [vmem:[%s3759_s4] ss:$8 sps:$4 sm:$0xff]   ;;  %v2484_v12 = vld [vmem:[%s3759_s4 + $0x4] ss:$8 sps:$4 sm:$0xff]   ;;  %v2487_v13 = vld [vmem:[%s3759_s4 + $0x14] ss:$8 sps:$4 sm:$0xff]   ;;  %s3604_s25 = scalar_lea.hbm %s3764_s9, %s2393_s1 }
  0x41   : > { %s3813_s29 = smov (!%p379_p11, %s2251_s29), 63  ;;  %2395 = vmatprep.subr.bf16.mxu0 %v2394_v5  ;;  %v2485_v15 = vld [vmem:[%s3759_s4 + $0x10] ss:$8 sps:$4 sm:$0xff]   ;;  %v2490_v16 = vld [vmem:[%s3759_s4 + $0x24] ss:$8 sps:$4 sm:$0xff]   ;;  %2398 = vmatprep.subr.bf16.mxu1 %v2484_v12  ;;  %s2113_s20 = scalar_lea.sflag [#allocation5], %s2793_s27 }
  0x42   : > { %s2252_s10 = sshll.u32 %s3813_s29, 3  ;;  %2397 = vmatpush1.bf16.msra.mxu0 %v2396_v7  ;;  %2414 = vmatpush1.bf16.msra.mxu1 %v2482_v11  ;;  %v2488_v18 = vld [vmem:[%s3759_s4 + $0x20] ss:$8 sps:$4 sm:$0xff]   ;;  %v2493_v19 = vld [vmem:[%s3759_s4 + $0x34] ss:$8 sps:$4 sm:$0xff]   ;;  %p3804_p12 = scmp.ne.s32.totalorder %s3771_s22, 0 }
  0x43   : > { %s2827_s19 = scalar_lea.vmem %s3755_s0, %s2252_s10  ;;  %1606 = vmatprep.subr.bf16.mxu0 %v2484_v12  ;;  %2399 = vmatprep.subr.bf16.mxu1 %v2487_v13  ;;  %v2491_v21 = vld [vmem:[%s3759_s4 + $0x30] ss:$8 sps:$4 sm:$0xff]   ;;  %v2496_v22 = vld [vmem:[%s3759_s4 + $0x44] ss:$8 sps:$4 sm:$0xff]   ;;  %v2494_v24 = vld [vmem:[%s3759_s4 + $0x40] ss:$8 sps:$4 sm:$0xff]  }
  0x44   : > { %v392_v8 = vld [vmem:[%s2827_s19] sm:$0xff]  ;;  %v393_v9 = vld [vmem:[%s2827_s19 + $0x8] sm:$0xff]  ;;  %v394_v10 = vld [vmem:[%s2827_s19 + $0x10] sm:$0xff]  ;;  %s2633_s7 = smov [#allocation6]  }
  0x45   : > { %2255 = vmatmul.mubr.msk.f32.vlgmr.msra.gmra.mrb[0].mxu0 %vm440_vm0, %v392_v8  ;;  %v395_v14 = vld [vmem:[%s2827_s19 + $0x18] sm:$0xff]  ;;  %v396_v17 = vld [vmem:[%s2827_s19 + $0x20] sm:$0xff]  ;;  %v397_v20 = vld [vmem:[%s2827_s19 + $0x28] sm:$0xff] }
  0x46   : > { %607 = vmatprep.mubr.f32.mxu0 %v2631_v1  ;;  %1607 = vmatpush1.bf16.msra.mxu0 %v2482_v11  ;;  %v398_v23 = vld [vmem:[%s2827_s19 + $0x30] sm:$0xff]  ;;  %v399_v26 = vld [vmem:[%s2827_s19 + $0x38] sm:$0xff]  ;;  %v2502_v28 = vld [vmem:[%s3759_s4 + $0x64] ss:$8 sps:$4 sm:$0xff]  }
  0x47   : > { %1608 = vmatprep.subr.bf16.mxu0 %v2487_v13  ;;  %2415 = vmatpush1.bf16.msra.mxu1 %v2485_v15  ;;  %v2499_v25 = vld [vmem:[%s3759_s4 + $0x54] ss:$8 sps:$4 sm:$0xff]   ;;  %v2497_v27 = vld [vmem:[%s3759_s4 + $0x50] ss:$8 sps:$4 sm:$0xff]   ;;  %v400_v29 = vld [vmem:[%s2827_s19 + $0x40] sm:$0xff] }
  0x48   : > { %2400 = vmatprep.subr.bf16.mxu1 %v2490_v16  ;;  %v2500_v30 = vld [vmem:[%s3759_s4 + $0x60] ss:$8 sps:$4 sm:$0xff]   ;;  %v2505_v31 = vld [vmem:[%s3759_s4 + $0x74] ss:$8 sps:$4 sm:$0xff]   ;;  %v2503_v33 = vld [vmem:[%s3759_s4 + $0x70] ss:$8 sps:$4 sm:$0xff]  }
  0x49   : > { %2256 = vmatmul.mubr.msk.f32.gmra.mrb[2].mxu0 %vm440_vm0, %v393_v9  ;;  %v401_v32 = vld [vmem:[%s2827_s19 + $0x48] sm:$0xff]  ;;  %v402_v35 = vld [vmem:[%s2827_s19 + $0x50] sm:$0xff]  ;;  %v403_v38 = vld [vmem:[%s2827_s19 + $0x58] sm:$0xff]  ;;  %v430_v9 = vlaneseq }
  0x4a   : > { %613 = vmatprep.mubr.f32.mxu0 %v2631_v1  ;;  %1609 = vmatpush1.bf16.msra.mxu0 %v2485_v15  ;;  %v2508_v34 = vld [vmem:[%s3759_s4 + $0x84] ss:$8 sps:$4 sm:$0xff]   ;;  %v2506_v36 = vld [vmem:[%s3759_s4 + $0x80] ss:$8 sps:$4 sm:$0xff]   ;;  %v2511_v37 = vld [vmem:[%s3759_s4 + $0x94] ss:$8 sps:$4 sm:$0xff]  }
  0x4b   : > { %1610 = vmatprep.subr.bf16.mxu0 %v2490_v16  ;;  %2416 = vmatpush1.bf16.msra.mxu1 %v2488_v18  ;;  %v2509_v39 = vld [vmem:[%s3759_s4 + $0x90] ss:$8 sps:$4 sm:$0xff]   ;;  %v2514_v40 = vld [vmem:[%s3759_s4 + $0xa4] ss:$8 sps:$4 sm:$0xff]   ;;  %v2512_v42 = vld [vmem:[%s3759_s4 + $0xa0] ss:$8 sps:$4 sm:$0xff]  }
  0x4c   : > { %2401 = vmatprep.subr.bf16.mxu1 %v2493_v19  ;;  %v404_v41 = vld [vmem:[%s2827_s19 + $0x60] sm:$0xff]  ;;  %v2517_v43 = vld [vmem:[%s3759_s4 + $0xb4] ss:$8 sps:$4 sm:$0xff]   ;;  %v405_v44 = vld [vmem:[%s2827_s19 + $0x68] sm:$0xff] }
  0x4d   : > { %2257 = vmatmul.mubr.msk.f32.gmra.mrb[4].mxu0 %vm440_vm0, %v394_v10  ;;  %v2515_v45 = vld [vmem:[%s3759_s4 + $0xb0] ss:$8 sps:$4 sm:$0xff]   ;;  %v2520_v46 = vld [vmem:[%s3759_s4 + $0xc4] ss:$8 sps:$4 sm:$0xff]   ;;  %v2518_v48 = vld [vmem:[%s3759_s4 + $0xc0] ss:$8 sps:$4 sm:$0xff]  }
  0x4e   : > { %619 = vmatprep.mubr.f32.mxu0 %v2631_v1  ;;  %1611 = vmatpush1.bf16.msra.mxu0 %v2488_v18  ;;  %v406_v47 = vld [vmem:[%s2827_s19 + $0x70] sm:$0xff]  ;;  %v407_v49 = vld [vmem:[%s2827_s19 + $0x78] sm:$0xff]  ;;  %v408_v50 = vld [vmem:[%s2827_s19 + $0x80] sm:$0xff]  ;;  %v431_v10 = vshrl.u32 %v430_v9, 7 }
  0x4f   : > { %1612 = vmatprep.subr.bf16.mxu0 %v2493_v19  ;;  %2417 = vmatpush1.bf16.msra.mxu1 %v2491_v21  ;;  %v409_v51 = vld [vmem:[%s2827_s19 + $0x88] sm:$0xff]  ;;  %v410_v52 = vld [vmem:[%s2827_s19 + $0x90] sm:$0xff]  ;;  %v411_v53 = vld [vmem:[%s2827_s19 + $0x98] sm:$0xff] }
  0x50   : > { %2402 = vmatprep.subr.bf16.mxu1 %v2496_v22  ;;  %v412_v54 = vld [vmem:[%s2827_s19 + $0xa0] sm:$0xff]  ;;  %v413_v55 = vld [vmem:[%s2827_s19 + $0xa8] sm:$0xff]  ;;  %v2523_v56 = vld [vmem:[%s3759_s4 + $0xd4] ss:$8 sps:$4 sm:$0xff]   ;;  %v3020_v11 = vsub.s32 0, %v431_v10  ;;  %v3025_v13 = vsub.s32 1, %v431_v10 }
  0x51   : > { %2258 = vmatmul.mubr.msk.f32.gmra.mrb[6].mxu0 %vm440_vm0, %v395_v14  ;;  %v414_v57 = vld [vmem:[%s2827_s19 + $0xb0] sm:$0xff]  ;;  %v2526_v59 = vld [vmem:[%s3759_s4 + $0xe4] ss:$8 sps:$4 sm:$0xff]   ;;  %v415_v60 = vld [vmem:[%s2827_s19 + $0xb8] sm:$0xff] }
  0x52   : > { %625 = vmatprep.mubr.f32.mxu0 %v2631_v1  ;;  %1613 = vmatpush1.bf16.msra.mxu0 %v2491_v21  ;;  %v2521_v58 = vld [vmem:[%s3759_s4 + $0xd0] ss:$8 sps:$4 sm:$0xff]   ;;  %v2524_v61 = vld [vmem:[%s3759_s4 + $0xe0] ss:$8 sps:$4 sm:$0xff]   ;;  %v2529_v62 = vld [vmem:[%s3759_s4 + $0xf4] ss:$8 sps:$4 sm:$0xff]  }
  0x53   : > { %1614 = vmatprep.subr.bf16.mxu0 %v2496_v22  ;;  %2418 = vmatpush1.bf16.msra.mxu1 %v2494_v24  ;;  %v416_v63 = vld [vmem:[%s2827_s19 + $0xc0] sm:$0xff]  ;;  %v2527_v0 = vld [vmem:[%s3759_s4 + $0xf0] ss:$8 sps:$4 sm:$0xff]   ;;  %v417_v2 = vld [vmem:[%s2827_s19 + $0xc8] sm:$0xff] }
  0x54   : > { %2403 = vmatprep.subr.bf16.mxu1 %v2499_v25  ;;  %v418_v3 = vld [vmem:[%s2827_s19 + $0xd0] sm:$0xff]  ;;  %v419_v4 = vld [vmem:[%s2827_s19 + $0xd8] sm:$0xff]  ;;  %v420_v5 = vld [vmem:[%s2827_s19 + $0xe0] sm:$0xff] }
  0x55   : > { %2259 = vmatmul.mubr.msk.f32.gmra.mrb[8].mxu0 %vm440_vm0, %v396_v17  ;;  %v421_v6 = vld [vmem:[%s2827_s19 + $0xe8] sm:$0xff]  ;;  %v422_v7 = vld [vmem:[%s2827_s19 + $0xf0] sm:$0xff]  ;;  %v423_v8 = vld [vmem:[%s2827_s19 + $0xf8] sm:$0xff]  ;;  %s3775_s19 = sshll.u32 %s2793_s27, 9 }
  0x56   : > { %631 = vmatprep.mubr.f32.mxu0 %v2631_v1  ;;  %1615 = vmatpush1.bf16.msra.mxu0 %v2494_v24  ;;  %v428_v12 = vld [vmem:[%s3758_s3] sm:$0x3]  ;;  %v795_v16 = vld [vmem:[%s2799_s30 + $0x8] sm:$0xff]  ;;  %v796_v21 = vld [vmem:[%s2799_s30 + $0x10] sm:$0xff]  ;;  %s3049_s21 = scalar_lea.vmem [#allocation6], %s3775_s19 }
  0x57   : > { %1616 = vmatprep.subr.bf16.mxu0 %v2499_v25  ;;  %2419 = vmatpush1.bf16.msra.mxu1 %v2497_v27  ;;  %v794_v14 = vld [vmem:[%s2799_s30] sm:$0xff]  ;;  %v3029_v15 = vrot.slane %v428_v12, %v3020_v11  ;;  %v3033_v17 = vrot.slane %v428_v12, %v3025_v13  ;;  %vm859_vm2 = vcmp.gt.f32.partialorder %v795_v16, 1.0  ;;  %v797_v24 = vld [vmem:[%s2799_s30 + $0x18] sm:$0xff]  ;;  %vm860_vm3 = vcmp.gt.f32.partialorder %v796_v21, 1.0  ;;  %v804_v12 = vld [vmem:[%s2799_s30 + $0x50] sm:$0xff]  ;;  %s2131_s28 = sshll.u32 %s3049_s21, 4  ;;  %s3606_s28 = int_to_ptr.vmem [resolvable:$true] %s2131_s28 }
  0x58   : > { %2404 = vmatprep.subr.bf16.mxu1 %v2502_v28  ;;  %vm858_vm1 = vcmp.gt.f32.partialorder %v794_v14, 1.0  ;;  %v986_v18 = vmul.f32 0.95, %v794_v14  ;;  %vm861_vm4 = vcmp.gt.f32.partialorder %v797_v24, 1.0  ;;  %v805_v14 = vld [vmem:[%s2799_s30 + $0x58] sm:$0xff]  ;;  %s2560_s19 = scalar_lea.vmem %s3606_s28, 8192 }
  0x59   : > { %2260 = vmatmul.mubr.msk.f32.gmra.mrb[10].mxu0 %vm440_vm0, %v397_v20  ;;  %v987_v20 = vmul.f32 0.95, %v795_v16  ;;  %v922_v25 = vsel %vm858_vm1, 1.0, %v2631_v1  ;;  %vm868_vm1 = vcmp.gt.f32.partialorder %v804_v12, 1.0  ;;  %p2561_p6 = scmp.ne.s32.totalorder %s3606_s28, %s2560_s19 }
  0x5a   : > { %637 = vmatprep.mubr.f32.mxu0 %v2631_v1  ;;  %1617 = vmatpush1.bf16.msra.mxu0 %v2497_v27 }
  0x5b   : > { %1618 = vmatprep.subr.bf16.mxu0 %v2502_v28  ;;  %2420 = vmatpush1.bf16.msra.mxu1 %v2500_v30  ;;  %v923_v28 = vsel %vm859_vm2, 1.0, %v2631_v1  ;;  %p2562_p13 = pnand %p2561_p6, %p3804_p12 }
  0x5c   : > { %2405 = vmatprep.subr.bf16.mxu1 %v2505_v31 }
  0x5d   : > { %2261 = vmatmul.mubr.msk.f32.gmra.mrb[12].mxu0 %vm440_vm0, %v398_v23  ;;  %p2563_p8 = pneg %p2562_p13 }
  0x5e   : > { %643 = vmatprep.mubr.f32.mxu0 %v2631_v1  ;;  %1619 = vmatpush1.bf16.msra.mxu0 %v2500_v30 }
  0x5f   : > { %1620 = vmatprep.subr.bf16.mxu0 %v2505_v31  ;;  %2421 = vmatpush1.bf16.msra.mxu1 %v2503_v33 }
  0x60   : > { %2406 = vmatprep.subr.bf16.mxu1 %v2508_v34 }
  0x61   : > { %2262 = vmatmul.mubr.msk.f32.gmra.mrb[14].mxu0 %vm440_vm0, %v399_v26 }
  0x62   : > { %649 = vmatprep.mubr.f32.mxu0 %v2631_v1  ;;  %1621 = vmatpush1.bf16.msra.mxu0 %v2503_v33  ;;  %v798_v33 = vld [vmem:[%s2799_s30 + $0x20] sm:$0xff] }
  0x63   : > { %1622 = vmatprep.subr.bf16.mxu0 %v2508_v34  ;;  %2422 = vmatpush1.bf16.msra.mxu1 %v2506_v36  ;;  %vm862_vm5 = vcmp.gt.f32.partialorder %v798_v33, 1.0 }
  0x64   : > { %2407 = vmatprep.subr.bf16.mxu1 %v2511_v37 }
  0x65   : > { %2263 = vmatmul.mubr.msk.f32.gmra.mrb[16].mxu0 %vm440_vm0, %v400_v29  ;;  %v988_v29 = vmul.f32 0.95, %v796_v21 }
  0x66   : > { %655 = vmatprep.mubr.f32.mxu0 %v2631_v1  ;;  %1623 = vmatpush1.bf16.msra.mxu0 %v2506_v36 }
  0x67   : > { %1624 = vmatprep.subr.bf16.mxu0 %v2511_v37  ;;  %2423 = vmatpush1.bf16.msra.mxu1 %v2509_v39  ;;  %v799_v37 = vld [vmem:[%s2799_s30 + $0x28] sm:$0xff] }
  0x68   : > { %2408 = vmatprep.subr.bf16.mxu1 %v2514_v40  ;;  %vm863_vm6 = vcmp.gt.f32.partialorder %v799_v37, 1.0 }
  0x69   : > { %2264 = vmatmul.mubr.msk.f32.gmra.mrb[18].mxu0 %vm440_vm0, %v401_v32  ;;  %v989_v32 = vmul.f32 0.95, %v797_v24 }
  0x6a   : > { %661 = vmatprep.mubr.f32.mxu0 %v2631_v1  ;;  %1625 = vmatpush1.bf16.msra.mxu0 %v2509_v39  ;;  %v924_v39 = vsel %vm860_vm3, 1.0, %v2631_v1 }
  0x6b   : > { %1626 = vmatprep.subr.bf16.mxu0 %v2514_v40  ;;  %2424 = vmatpush1.bf16.msra.mxu1 %v2512_v42 }
  0x6c   : > { %2409 = vmatprep.subr.bf16.mxu1 %v2517_v43 }
  0x6d   : > { %2265 = vmatmul.mubr.msk.f32.gmra.mrb[20].mxu0 %vm440_vm0, %v402_v35 }
  0x6e   : > { %667 = vmatprep.mubr.f32.mxu0 %v2631_v1  ;;  %1627 = vmatpush1.bf16.msra.mxu0 %v2512_v42 }
  0x6f   : > { %1628 = vmatprep.subr.bf16.mxu0 %v2517_v43  ;;  %2425 = vmatpush1.bf16.msra.mxu1 %v2515_v45  ;;  %v925_v43 = vsel %vm861_vm4, 1.0, %v2631_v1  ;;  %vm869_vm4 = vcmp.gt.f32.partialorder %v805_v14, 1.0 }
  0x70   : > { %2410 = vmatprep.subr.bf16.mxu1 %v2520_v46 }
  0x71   : > { %2266 = vmatmul.mubr.msk.f32.gmra.mrb[22].mxu0 %vm440_vm0, %v403_v38 }
  0x72   : > { %673 = vmatprep.mubr.f32.mxu0 %v2631_v1  ;;  %1629 = vmatpush1.bf16.msra.mxu0 %v2515_v45 }
  0x73   : > { %1630 = vmatprep.subr.bf16.mxu0 %v2520_v46  ;;  %2426 = vmatpush1.bf16.msra.mxu1 %v2518_v48 }
  0x74   : > { %2411 = vmatprep.subr.bf16.mxu1 %v2523_v56 }
  0x75   : > { %2267 = vmatmul.mubr.msk.f32.gmra.mrb[24].mxu0 %vm440_vm0, %v404_v41  ;;  %v800_v41 = vld [vmem:[%s2799_s30 + $0x30] sm:$0xff] }
  0x76   : > { %679 = vmatprep.mubr.f32.mxu0 %v2631_v1  ;;  %1631 = vmatpush1.bf16.msra.mxu0 %v2518_v48  ;;  %v991_v48 = vmul.f32 0.95, %v799_v37  ;;  %vm864_vm7 = vcmp.gt.f32.partialorder %v800_v41, 1.0  ;;  %v807_v37 = vld [vmem:[%s2799_s30 + $0x68] sm:$0xff] }
  0x77   : > { %1632 = vmatprep.subr.bf16.mxu0 %v2523_v56  ;;  %2427 = vmatpush1.bf16.msra.mxu1 %v2521_v58 }
  0x78   : > { %2412 = vmatprep.subr.bf16.mxu1 %v2526_v59 }
  0x79   : > { %2268 = vmatmul.mubr.msk.f32.gmra.mrb[26].mxu0 %vm440_vm0, %v405_v44  ;;  %v990_v44 = vmul.f32 0.95, %v798_v33  ;;  %v806_v33 = vld [vmem:[%s2799_s30 + $0x60] sm:$0xff] }
  0x7a   : > { %685 = vmatprep.mubr.f32.mxu0 %v2631_v1  ;;  %1633 = vmatpush1.bf16.msra.mxu0 %v2521_v58 }
  0x7b   : > { %1634 = vmatprep.subr.bf16.mxu0 %v2526_v59  ;;  %2428 = vmatpush1.bf16.msra.mxu1 %v2524_v61 }
  0x7c   : > { %2413 = vmatprep.subr.bf16.mxu1 %v2529_v62 }
  0x7d   : > { %2269 = vmatmul.mubr.msk.f32.gmra.mrb[28].mxu0 %vm440_vm0, %v406_v47  ;;  %v926_v47 = vsel %vm862_vm5, 1.0, %v2631_v1 }
  0x7e   : > { %691 = vmatprep.mubr.f32.mxu0 %v2631_v1  ;;  %1635 = vmatpush1.bf16.msra.mxu0 %v2524_v61 }
  0x7f   : > { %1636 = vmatprep.subr.bf16.mxu0 %v2529_v62  ;;  %2429 = vmatpush1.bf16.msra.mxu1 %v2527_v0  ;;  %v802_v62 = vld [vmem:[%s2799_s30 + $0x40] sm:$0xff] }
  0x80   : > { %vm866_vm15 = vcmp.gt.f32.partialorder %v802_v62, 1.0  ;;  %v994_v10 = vmul.f32 0.95, %v802_v62  ;;  %v810_v62 = vld [vmem:[%s2799_s30 + $0x80] sm:$0xff] }
  0x81   : > { %2270 = vmatmul.mubr.msk.f32.gmra.mrb[30].mxu0 %vm440_vm0, %v407_v49  ;;  %v801_v49 = vld [vmem:[%s2799_s30 + $0x38] sm:$0xff] }
  0x82   : > { %697 = vmatprep.mubr.f32.mxu0 %v2631_v1  ;;  %1637 = vmatpush1.bf16.msra.mxu0 %v2527_v0  ;;  %v993_v58 = vmul.f32 0.95, %v801_v49  ;;  %vm865_vm11 = vcmp.gt.f32.partialorder %v801_v49, 1.0 }
  0x83   : > { %v929_v9 = vsel %vm865_vm11, 1.0, %v2631_v1 }
  0x85   : > { %2271 = vmatmul.mubr.msk.f32.gmra.mrb[32].mxu0 %vm440_vm0, %v408_v50 }
  0x86   : > { %703 = vmatprep.mubr.f32.mxu0 %v2631_v1 }
  0x89   : > { %2272 = vmatmul.mubr.msk.f32.gmra.mrb[34].mxu0 %vm440_vm0, %v409_v51 }
  0x8a   : > { %709 = vmatprep.mubr.f32.mxu0 %v2631_v1 }
  0x8d   : > { %2273 = vmatmul.mubr.msk.f32.gmra.mrb[36].mxu0 %vm440_vm0, %v410_v52 }
  0x8e   : > { %715 = vmatprep.mubr.f32.mxu0 %v2631_v1 }
  0x91   : > { %2274 = vmatmul.mubr.msk.f32.gmra.mrb[38].mxu0 %vm440_vm0, %v411_v53  ;;  %v927_v53 = vsel %vm863_vm6, 1.0, %v2631_v1 }
  0x92   : > { %721 = vmatprep.mubr.f32.mxu0 %v2631_v1 }
  0x95   : > { %2275 = vmatmul.mubr.msk.f32.gmra.mrb[40].mxu0 %vm440_vm0, %v412_v54  ;;  %v992_v54 = vmul.f32 0.95, %v800_v41  ;;  %v808_v41 = vld [vmem:[%s2799_s30 + $0x70] sm:$0xff] }
  0x96   : > { %727 = vmatprep.mubr.f32.mxu0 %v2631_v1  ;;  %vm872_vm11 = vcmp.gt.f32.partialorder %v808_v41, 1.0 }
  0x99   : > { %2276 = vmatmul.mubr.msk.f32.gmra.mrb[42].mxu0 %vm440_vm0, %v413_v55 }
  0x9a   : > { %733 = vmatprep.mubr.f32.mxu0 %v2631_v1 }
  0x9d   : > { %2277 = vmatmul.mubr.msk.f32.gmra.mrb[44].mxu0 %vm440_vm0, %v414_v57 }
  0x9e   : > { %739 = vmatprep.mubr.f32.mxu0 %v2631_v1 }
  0xa1   : > { %2278 = vmatmul.mubr.msk.f32.gmra.mrb[46].mxu0 %vm440_vm0, %v415_v60 }
  0xa2   : > { %745 = vmatprep.mubr.f32.mxu0 %v2631_v1 }
  0xa5   : > { %2279 = vmatmul.mubr.msk.f32.gmra.mrb[48].mxu0 %vm440_vm0, %v416_v63 }
  0xa6   : > { %751 = vmatprep.mubr.f32.mxu0 %v2631_v1 }
  0xa9   : > { %2280 = vmatmul.mubr.msk.f32.gmra.mrb[50].mxu0 %vm440_vm0, %v417_v2  ;;  %v928_v2 = vsel %vm864_vm7, 1.0, %v2631_v1 }
  0xaa   : > { %757 = vmatprep.mubr.f32.mxu0 %v2631_v1 }
  0xad   : > { %2281 = vmatmul.mubr.msk.f32.gmra.mrb[52].mxu0 %vm440_vm0, %v418_v3 }
  0xae   : > { %763 = vmatprep.mubr.f32.mxu0 %v2631_v1 }
  0xb1   : > { %2282 = vmatmul.mubr.msk.f32.gmra.mrb[54].mxu0 %vm440_vm0, %v419_v4  ;;  %v803_v4 = vld [vmem:[%s2799_s30 + $0x48] sm:$0xff] }
  0xb2   : > { %769 = vmatprep.mubr.f32.mxu0 %v2631_v1 }
  0xb5   : > { %2283 = vmatmul.mubr.msk.f32.gmra.mrb[56].mxu0 %vm440_vm0, %v420_v5 }
  0xb6   : > { %775 = vmatprep.mubr.f32.mxu0 %v2631_v1 }
  0xb9   : > { %2284 = vmatmul.mubr.msk.f32.gmra.mrb[58].mxu0 %vm440_vm0, %v421_v6 }
  0xba   : > { %781 = vmatprep.mubr.f32.mxu0 %v2631_v1 }
  0xbd   : > { %2285 = vmatmul.mubr.msk.f32.gmra.mrb[60].mxu0 %vm440_vm0, %v422_v7  ;;  %v2632_v7 = vmov 1.0|1.0  }
  0xbe   : > { %787 = vmatprep.mubr.f32.mxu0 %v2631_v1 }
  0xc1   : > { %2286 = vmatmul.mubr.msk.f32.gmra.mrb[62].mxu0 %vm440_vm0, %v423_v8  ;;  %vm867_vm0 = vcmp.gt.f32.partialorder %v803_v4, 1.0 }
  0xc2   : > { %v931_v24 = vsel %vm867_vm0, 1.0, %v2631_v1 }
 0x118   : > { %v603_v19 = vpop.f32.mrb[0].mxu0 }
 0x119   : > { %v604_v22 = vadd.f32 %v603_v19, %v3029_v15  ;;  %v605_v23 = vpop.f32.mrb[1].mxu0  ;;  %v995_v19 = vmul.f32 0.95, %v803_v4  ;;  %v811_v4 = vld [vmem:[%s2799_s30 + $0x88] sm:$0xff] }
 0x11a   : > { %v606_v26 = vadd.f32 %v605_v23, %v3033_v17 }
 0x11b   : > { %v1050_v27 = vadd.f32 %v986_v18, %v604_v22  ;;  %v930_v22 = vsel %vm866_vm15, 1.0, %v2631_v1 }
 0x11c   : > { %v1051_v30 = vadd.f32 %v987_v20, %v606_v26  ;;  %v609_v31 = vpop.f32.mrb[2].mxu0 }
 0x11d   : > { %v1114_v34 = vsub.f32 %v1050_v27, %v922_v25  ;;  %v610_v35 = vadd.f32 %v609_v31, %v3029_v15  ;;  %v611_v36 = vpop.f32.mrb[3].mxu0  ;;  %v996_v27 = vmul.f32 0.95, %v804_v12 }
 0x11e   : > { %v1115_v38 = vsub.f32 %v1051_v30, %v923_v28  ;;  %v612_v40 = vadd.f32 %v611_v36, %v3033_v17  ;;  %v997_v28 = vmul.f32 0.95, %v805_v14 }
 0x11f   : > { %1306 = vst [vmem:[%s3049_s21] sm:$0xff] %v1114_v34  ;;  %v1052_v42 = vadd.f32 %v988_v29, %v610_v35  ;;  %vm1178_vm8 = vcmp.gt.f32.partialorder %v1114_v34, 1.0 }
 0x120   : > { %1307 = vst [vmem:[%s3049_s21 + $0x8] sm:$0xff] %v1115_v38  ;;  %v1053_v45 = vadd.f32 %v989_v32, %v612_v40  ;;  %v615_v46 = vpop.f32.mrb[4].mxu0  ;;  %vm1179_vm12 = vcmp.gt.f32.partialorder %v1115_v38, 1.0 }
 0x121   : > { %v1116_v50 = vsub.f32 %v1052_v42, %v924_v39  ;;  %v616_v51 = vadd.f32 %v615_v46, %v3029_v15  ;;  %v617_v52 = vpop.f32.mrb[5].mxu0  ;;  %v932_v39 = vsel %vm868_vm1, 1.0, %v2631_v1 }
 0x122   : > { %v1117_v55 = vsub.f32 %v1053_v45, %v925_v43  ;;  %v618_v56 = vadd.f32 %v617_v52, %v3033_v17  ;;  %v933_v43 = vsel %vm869_vm4, 1.0, %v2631_v1  ;;  %vm875_vm4 = vcmp.gt.f32.partialorder %v811_v4, 1.0 }
 0x123   : > { %vm1180_vm9 = vcmp.gt.f32.partialorder %v1116_v50, 1.0  ;;  %1308 = vst [vmem:[%s3049_s21 + $0x10] sm:$0xff] %v1116_v50  ;;  %v1054_v57 = vadd.f32 %v990_v44, %v616_v51  ;;  %v998_v44 = vmul.f32 0.95, %v806_v33 }
 0x124   : > { %vm3062_vm10 = vmpackc.low %vm1180_vm9, %vm1178_vm8  ;;  %1309 = vst [vmem:[%s3049_s21 + $0x18] sm:$0xff] %v1117_v55  ;;  %v1055_v60 = vadd.f32 %v991_v48, %v618_v56  ;;  %v621_v61 = vpop.f32.mrb[6].mxu0  ;;  %vm1181_vm13 = vcmp.gt.f32.partialorder %v1117_v55, 1.0  ;;  %vm870_vm9 = vcmp.gt.f32.partialorder %v806_v33, 1.0  ;;  %v809_v48 = vld [vmem:[%s2799_s30 + $0x78] sm:$0xff]  ;;  %v814_v33 = vld [vmem:[%s2799_s30 + $0xa0] sm:$0xff] }
 0x125   : > { %v1118_v63 = vsub.f32 %v1054_v57, %v926_v47  ;;  %v622_v0 = vadd.f32 %v621_v61, %v3029_v15  ;;  %v623_v3 = vpop.f32.mrb[7].mxu0  ;;  %vm2319_vm14 = vmpackc.low %vm1181_vm13, %vm1179_vm12  ;;  %v999_v47 = vmul.f32 0.95, %v807_v37  ;;  %v934_v51 = vsel %vm870_vm9, 1.0, %v2631_v1 }
 0x126   : > { %v1119_v5 = vsub.f32 %v1055_v60, %v927_v53  ;;  %v624_v6 = vadd.f32 %v623_v3, %v3033_v17  ;;  %2320 = vmatprep.mubr.msk.bf16.mxu0 %vm2319_vm14, %v2632_v7  ;;  %v1000_v53 = vmul.f32 0.95, %v808_v41  ;;  %vm873_vm1 = vcmp.gt.f32.partialorder %v809_v48, 1.0 }
 0x127   : > { %1310 = vst [vmem:[%s3049_s21 + $0x20] sm:$0xff] %v1118_v63  ;;  %v1056_v8 = vadd.f32 %v992_v54, %v622_v0  ;;  %2322 = vmatmul.mubr.msk.bf16.vlgmr.msra.gmra.mrb[64].mxu0 %vm3062_vm10, %v2632_v7  ;;  %vm1182_vm2 = vcmp.gt.f32.partialorder %v1118_v63, 1.0  ;;  %vm871_vm10 = vcmp.gt.f32.partialorder %v807_v37, 1.0  ;;  %v937_v12 = vsel %vm873_vm1, 1.0, %v2631_v1 }
 0x128   : > { %1311 = vst [vmem:[%s3049_s21 + $0x28] sm:$0xff] %v1119_v5  ;;  %v1057_v16 = vadd.f32 %v993_v58, %v624_v6  ;;  %v627_v18 = vpop.f32.mrb[8].mxu0  ;;  %vm1183_vm5 = vcmp.gt.f32.partialorder %v1119_v5, 1.0  ;;  %v935_v56 = vsel %vm871_vm10, 1.0, %v2631_v1  ;;  %v1001_v58 = vmul.f32 0.95, %v809_v48 }
 0x129   : > { %v1120_v20 = vsub.f32 %v1056_v8, %v928_v2  ;;  %v628_v21 = vadd.f32 %v627_v18, %v3029_v15  ;;  %v629_v23 = vpop.f32.mrb[9].mxu0  ;;  %v936_v2 = vsel %vm872_vm11, 1.0, %v2631_v1  ;;  %v1003_v18 = vmul.f32 0.95, %v811_v4  ;;  %v817_v48 = vld [vmem:[%s2799_s30 + $0xb8] sm:$0xff]  ;;  %v819_v4 = vld [vmem:[%s2799_s30 + $0xc8] sm:$0xff] }
 0x12a   : > { %v1121_v25 = vsub.f32 %v1057_v16, %v929_v9  ;;  %v630_v26 = vadd.f32 %v629_v23, %v3033_v17  ;;  %v1002_v9 = vmul.f32 0.95, %v810_v62 }
 0x12b   : > { %1312 = vst [vmem:[%s3049_s21 + $0x30] sm:$0xff] %v1120_v20  ;;  %v1058_v29 = vadd.f32 %v994_v10, %v628_v21  ;;  %vm1184_vm3 = vcmp.gt.f32.partialorder %v1120_v20, 1.0  ;;  %v812_v10 = vld [vmem:[%s2799_s30 + $0x90] sm:$0xff] }
 0x12c   : > { %1313 = vst [vmem:[%s3049_s21 + $0x38] sm:$0xff] %v1121_v25  ;;  %v1059_v30 = vadd.f32 %v995_v19, %v630_v26  ;;  %v633_v31 = vpop.f32.mrb[10].mxu0  ;;  %vm1185_vm6 = vcmp.gt.f32.partialorder %v1121_v25, 1.0  ;;  %vm3090_vm7 = vmpackc.low %vm1184_vm3, %vm1182_vm2  ;;  %vm874_vm3 = vcmp.gt.f32.partialorder %v810_v62, 1.0  ;;  %v813_v19 = vld [vmem:[%s2799_s30 + $0x98] sm:$0xff]  ;;  %v818_v62 = vld [vmem:[%s2799_s30 + $0xc0] sm:$0xff] }
 0x12d   : > { %v1122_v34 = vsub.f32 %v1058_v29, %v930_v22  ;;  %v634_v35 = vadd.f32 %v633_v31, %v3029_v15  ;;  %v635_v36 = vpop.f32.mrb[11].mxu0  ;;  %vm2323_vm8 = vmpackc.low %vm1185_vm6, %vm1183_vm5  ;;  %v938_v22 = vsel %vm874_vm3, 1.0, %v2631_v1  ;;  %vm876_vm5 = vcmp.gt.f32.partialorder %v812_v10, 1.0 }
 0x12e   : > { %v1123_v38 = vsub.f32 %v1059_v30, %v931_v24  ;;  %v636_v40 = vadd.f32 %v635_v36, %v3033_v17  ;;  %2324 = vmatprep.mubr.msk.bf16.mxu0 %vm2323_vm8, %v2632_v7  ;;  %v939_v24 = vsel %vm875_vm4, 1.0, %v2631_v1  ;;  %v1004_v26 = vmul.f32 0.95, %v812_v10 }
 0x12f   : > { %1314 = vst [vmem:[%s3049_s21 + $0x40] sm:$0xff] %v1122_v34  ;;  %v1060_v42 = vadd.f32 %v996_v27, %v634_v35  ;;  %2326 = vmatmul.mubr.msk.bf16.gmra.mrb[68].mxu0 %vm3090_vm7, %v2632_v7  ;;  %vm1186_vm12 = vcmp.gt.f32.partialorder %v1122_v34, 1.0  ;;  %v1005_v29 = vmul.f32 0.95, %v813_v19  ;;  %vm877_vm8 = vcmp.gt.f32.partialorder %v813_v19, 1.0  ;;  %v821_v19 = vld [vmem:[%s2799_s30 + $0xd8] sm:$0xff] }
 0x130   : > { %1315 = vst [vmem:[%s3049_s21 + $0x48] sm:$0xff] %v1123_v38  ;;  %v1061_v45 = vadd.f32 %v997_v28, %v636_v40  ;;  %v639_v46 = vpop.f32.mrb[12].mxu0  ;;  %vm1187_vm14 = vcmp.gt.f32.partialorder %v1123_v38, 1.0  ;;  %v940_v36 = vsel %vm876_vm5, 1.0, %v2631_v1  ;;  %v815_v38 = vld [vmem:[%s2799_s30 + $0xa8] sm:$0xff] }
 0x131   : > { %v1124_v49 = vsub.f32 %v1060_v42, %v932_v39  ;;  %v640_v50 = vadd.f32 %v639_v46, %v3029_v15  ;;  %v641_v52 = vpop.f32.mrb[13].mxu0  ;;  %v941_v42 = vsel %vm877_vm8, 1.0, %v2631_v1  ;;  %vm883_vm8 = vcmp.gt.f32.partialorder %v819_v4, 1.0 }
 0x132   : > { %v1125_v54 = vsub.f32 %v1061_v45, %v933_v43  ;;  %v642_v55 = vadd.f32 %v641_v52, %v3033_v17  ;;  %v1006_v43 = vmul.f32 0.95, %v814_v33  ;;  %v1010_v10 = vmul.f32 0.95, %v818_v62 }
 0x133   : > { %1316 = vst [vmem:[%s3049_s21 + $0x50] sm:$0xff] %v1124_v49  ;;  %v1062_v57 = vadd.f32 %v998_v44, %v640_v50  ;;  %vm1188_vm13 = vcmp.gt.f32.partialorder %v1124_v49, 1.0  ;;  %v816_v44 = vld [vmem:[%s2799_s30 + $0xb0] sm:$0xff] }
 0x134   : > { %1317 = vst [vmem:[%s3049_s21 + $0x58] sm:$0xff] %v1125_v54  ;;  %v1063_v59 = vadd.f32 %v999_v47, %v642_v55  ;;  %v645_v60 = vpop.f32.mrb[14].mxu0  ;;  %vm1189_vm15 = vcmp.gt.f32.partialorder %v1125_v54, 1.0  ;;  %vm3116_vm0 = vmpackc.low %vm1188_vm13, %vm1186_vm12  ;;  %vm878_vm13 = vcmp.gt.f32.partialorder %v814_v33, 1.0  ;;  %v1007_v47 = vmul.f32 0.95, %v815_v38 }
 0x135   : > { %v1126_v63 = vsub.f32 %v1062_v57, %v934_v51  ;;  %v646_v0 = vadd.f32 %v645_v60, %v3029_v15  ;;  %v647_v3 = vpop.f32.mrb[15].mxu0  ;;  %vm2327_vm2 = vmpackc.low %vm1189_vm15, %vm1187_vm14  ;;  %vm879_vm14 = vcmp.gt.f32.partialorder %v815_v38, 1.0  ;;  %v942_v51 = vsel %vm878_vm13, 1.0, %v2631_v1  ;;  %v822_v33 = vld [vmem:[%s2799_s30 + $0xe0] sm:$0xff]  ;;  %v823_v38 = vld [vmem:[%s2799_s30 + $0xe8] sm:$0xff] }
 0x136   : > { %v648_v5 = vadd.f32 %v647_v3, %v3033_v17  ;;  %2328 = vmatprep.mubr.msk.bf16.mxu0 %vm2327_vm2, %v2632_v7  ;;  %v1127_v6 = vsub.f32 %v1063_v59, %v935_v56  ;;  %vm880_vm15 = vcmp.gt.f32.partialorder %v816_v44, 1.0  ;;  %v1008_v56 = vmul.f32 0.95, %v816_v44  ;;  %v824_v44 = vld [vmem:[%s2799_s30 + $0xf0] sm:$0xff] }
 0x137   : > { %1318 = vst [vmem:[%s3049_s21 + $0x60] sm:$0xff] %v1126_v63  ;;  %v1064_v8 = vadd.f32 %v1000_v53, %v646_v0  ;;  %2330 = vmatmul.mubr.msk.bf16.gmra.mrb[72].mxu0 %vm3116_vm0, %v2632_v7  ;;  %vm1190_vm6 = vcmp.gt.f32.partialorder %v1126_v63, 1.0  ;;  %v943_v53 = vsel %vm879_vm14, 1.0, %v2631_v1  ;;  %vm881_vm2 = vcmp.gt.f32.partialorder %v817_v48, 1.0 }
 0x138   : > { %v1065_v14 = vadd.f32 %v1001_v58, %v648_v5  ;;  %v651_v16 = vpop.f32.mrb[16].mxu0  ;;  %1319 = vst [vmem:[%s3049_s21 + $0x68] sm:$0xff] %v1127_v6  ;;  %vm1191_vm9 = vcmp.gt.f32.partialorder %v1127_v6, 1.0  ;;  %v1009_v58 = vmul.f32 0.95, %v817_v48  ;;  %v825_v48 = vld [vmem:[%s2799_s30 + $0xf8] sm:$0xff] }
 0x139   : > { %v1128_v20 = vsub.f32 %v1064_v8, %v936_v2  ;;  %v652_v21 = vadd.f32 %v651_v16, %v3029_v15  ;;  %v653_v23 = vpop.f32.mrb[17].mxu0  ;;  %v944_v2 = vsel %vm880_vm15, 1.0, %v2631_v1 }
 0x13a   : > { %v654_v25 = vadd.f32 %v653_v23, %v3033_v17  ;;  %v1129_v27 = vsub.f32 %v1065_v14, %v937_v12  ;;  %v820_v12 = vld [vmem:[%s2799_s30 + $0xd0] sm:$0xff] }
 0x13b   : > { %1320 = vst [vmem:[%s3049_s21 + $0x70] sm:$0xff] %v1128_v20  ;;  %v1066_v28 = vadd.f32 %v1002_v9, %v652_v21  ;;  %vm1192_vm7 = vcmp.gt.f32.partialorder %v1128_v20, 1.0  ;;  %v945_v9 = vsel %vm881_vm2, 1.0, %v2631_v1  ;;  %vm887_vm2 = vcmp.gt.f32.partialorder %v823_v38, 1.0 }
 0x13c   : > { %v1067_v30 = vadd.f32 %v1003_v18, %v654_v25  ;;  %v657_v31 = vpop.f32.mrb[18].mxu0  ;;  %vm1193_vm10 = vcmp.gt.f32.partialorder %v1129_v27, 1.0  ;;  %1321 = vst [vmem:[%s3049_s21 + $0x78] sm:$0xff] %v1129_v27  ;;  %vm3144_vm11 = vmpackc.low %vm1192_vm7, %vm1190_vm6  ;;  %vm882_vm7 = vcmp.gt.f32.partialorder %v818_v62, 1.0  ;;  %v1011_v18 = vmul.f32 0.95, %v819_v4 }
 0x13d   : > { %v1130_v34 = vsub.f32 %v1066_v28, %v938_v22  ;;  %v658_v35 = vadd.f32 %v657_v31, %v3029_v15  ;;  %v659_v37 = vpop.f32.mrb[19].mxu0  ;;  %vm2331_vm12 = vmpackc.low %vm1193_vm10, %vm1191_vm9  ;;  %v946_v22 = vsel %vm882_vm7, 1.0, %v2631_v1  ;;  %vm884_vm9 = vcmp.gt.f32.partialorder %v820_v12, 1.0  ;;  %v826_v62 = vld [vmem:[%s2799_s30 + $0x100] sm:$0xff]  ;;  %v827_v4 = vld [vmem:[%s2799_s30 + $0x108] sm:$0xff] }
 0x13e   : > { %v1131_v39 = vsub.f32 %v1067_v30, %v939_v24  ;;  %v660_v40 = vadd.f32 %v659_v37, %v3033_v17  ;;  %2332 = vmatprep.mubr.msk.bf16.mxu1 %vm2331_vm12, %v2632_v7  ;;  %v947_v24 = vsel %vm883_vm8, 1.0, %v2631_v1  ;;  %v1012_v27 = vmul.f32 0.95, %v820_v12  ;;  %v828_v12 = vld [vmem:[%s2799_s30 + $0x110] sm:$0xff] }
 0x13f   : > { %1322 = vst [vmem:[%s3049_s21 + $0x80] sm:$0xff] %v1130_v34  ;;  %v1068_v41 = vadd.f32 %v1004_v26, %v658_v35  ;;  %2334 = vmatmul.mubr.msk.bf16.vlgmr.msra.gmra.mrb[0].mxu1 %vm3144_vm11, %v2632_v7  ;;  %vm1194_vm0 = vcmp.gt.f32.partialorder %v1130_v34, 1.0  ;;  %vm885_vm12 = vcmp.gt.f32.partialorder %v821_v19, 1.0 }
 0x140   : > { %1323 = vst [vmem:[%s3049_s21 + $0x88] sm:$0xff] %v1131_v39  ;;  %v1069_v45 = vadd.f32 %v1005_v29, %v660_v40  ;;  %v663_v46 = vpop.f32.mrb[20].mxu0  ;;  %vm1195_vm3 = vcmp.gt.f32.partialorder %v1131_v39, 1.0  ;;  %v1013_v29 = vmul.f32 0.95, %v821_v19  ;;  %v829_v19 = vld [vmem:[%s2799_s30 + $0x118] sm:$0xff] }
 0x141   : > { %v1132_v49 = vsub.f32 %v1068_v41, %v940_v36  ;;  %v664_v50 = vadd.f32 %v663_v46, %v3029_v15  ;;  %v665_v52 = vpop.f32.mrb[21].mxu0  ;;  %v948_v36 = vsel %vm884_vm9, 1.0, %v2631_v1 }
 0x142   : > { %v1133_v54 = vsub.f32 %v1069_v45, %v941_v42  ;;  %v666_v55 = vadd.f32 %v665_v52, %v3033_v17  ;;  %v949_v42 = vsel %vm885_vm12, 1.0, %v2631_v1  ;;  %vm891_vm12 = vcmp.gt.f32.partialorder %v827_v4, 1.0 }
 0x143   : > { %1324 = vst [vmem:[%s3049_s21 + $0x90] sm:$0xff] %v1132_v49  ;;  %v1070_v57 = vadd.f32 %v1006_v43, %v664_v50  ;;  %vm1196_vm1 = vcmp.gt.f32.partialorder %v1132_v49, 1.0  ;;  %v1014_v43 = vmul.f32 0.95, %v822_v33 }
 0x144   : > { %1325 = vst [vmem:[%s3049_s21 + $0x98] sm:$0xff] %v1133_v54  ;;  %v1071_v59 = vadd.f32 %v1007_v47, %v666_v55  ;;  %v669_v60 = vpop.f32.mrb[22].mxu0  ;;  %vm1197_vm4 = vcmp.gt.f32.partialorder %v1133_v54, 1.0  ;;  %vm3171_vm5 = vmpackc.low %vm1196_vm1, %vm1194_vm0  ;;  %vm886_vm1 = vcmp.gt.f32.partialorder %v822_v33, 1.0  ;;  %v1015_v47 = vmul.f32 0.95, %v823_v38 }
 0x145   : > { %v1134_v63 = vsub.f32 %v1070_v57, %v942_v51  ;;  %v670_v0 = vadd.f32 %v669_v60, %v3029_v15  ;;  %v671_v3 = vpop.f32.mrb[23].mxu0  ;;  %vm2335_vm6 = vmpackc.low %vm1197_vm4, %vm1195_vm3  ;;  %v950_v51 = vsel %vm886_vm1, 1.0, %v2631_v1  ;;  %vm888_vm3 = vcmp.gt.f32.partialorder %v824_v44, 1.0  ;;  %v830_v33 = vld [vmem:[%s2799_s30 + $0x120] sm:$0xff]  ;;  %v831_v38 = vld [vmem:[%s2799_s30 + $0x128] sm:$0xff] }
 0x146   : > { %v1135_v5 = vsub.f32 %v1071_v59, %v943_v53  ;;  %v672_v6 = vadd.f32 %v671_v3, %v3033_v17  ;;  %2336 = vmatprep.mubr.msk.bf16.mxu1 %vm2335_vm6, %v2632_v7  ;;  %v951_v53 = vsel %vm887_vm2, 1.0, %v2631_v1  ;;  %vm889_vm6 = vcmp.gt.f32.partialorder %v825_v48, 1.0 }
 0x147   : > { %1326 = vst [vmem:[%s3049_s21 + $0xa0] sm:$0xff] %v1134_v63  ;;  %v1072_v8 = vadd.f32 %v1008_v56, %v670_v0  ;;  %2338 = vmatmul.mubr.msk.bf16.gmra.mrb[4].mxu1 %vm3171_vm5, %v2632_v7  ;;  %vm1198_vm10 = vcmp.gt.f32.partialorder %v1134_v63, 1.0  ;;  %v1016_v56 = vmul.f32 0.95, %v824_v44  ;;  %v832_v44 = vld [vmem:[%s2799_s30 + $0x130] sm:$0xff] }
 0x148   : > { %1327 = vst [vmem:[%s3049_s21 + $0xa8] sm:$0xff] %v1135_v5  ;;  %v1073_v14 = vadd.f32 %v1009_v58, %v672_v6  ;;  %v675_v16 = vpop.f32.mrb[24].mxu0  ;;  %vm1199_vm13 = vcmp.gt.f32.partialorder %v1135_v5, 1.0  ;;  %v1017_v58 = vmul.f32 0.95, %v825_v48  ;;  %v833_v48 = vld [vmem:[%s2799_s30 + $0x138] sm:$0xff] }
 0x149   : > { %v1136_v20 = vsub.f32 %v1072_v8, %v944_v2  ;;  %v676_v21 = vadd.f32 %v675_v16, %v3029_v15  ;;  %v677_v23 = vpop.f32.mrb[25].mxu0  ;;  %v952_v2 = vsel %vm888_vm3, 1.0, %v2631_v1 }
 0x14a   : > { %v1137_v25 = vsub.f32 %v1073_v14, %v945_v9  ;;  %v678_v26 = vadd.f32 %v677_v23, %v3033_v17  ;;  %v953_v9 = vsel %vm889_vm6, 1.0, %v2631_v1  ;;  %vm895_vm6 = vcmp.gt.f32.partialorder %v831_v38, 1.0 }
 0x14b   : > { %1328 = vst [vmem:[%s3049_s21 + $0xb0] sm:$0xff] %v1136_v20  ;;  %v1074_v28 = vadd.f32 %v1010_v10, %v676_v21  ;;  %vm1200_vm11 = vcmp.gt.f32.partialorder %v1136_v20, 1.0  ;;  %v1018_v10 = vmul.f32 0.95, %v826_v62 }
 0x14c   : > { %1329 = vst [vmem:[%s3049_s21 + $0xb8] sm:$0xff] %v1137_v25  ;;  %v1075_v30 = vadd.f32 %v1011_v18, %v678_v26  ;;  %v681_v31 = vpop.f32.mrb[26].mxu0  ;;  %vm1201_vm14 = vcmp.gt.f32.partialorder %v1137_v25, 1.0  ;;  %vm3198_vm15 = vmpackc.low %vm1200_vm11, %vm1198_vm10  ;;  %vm890_vm11 = vcmp.gt.f32.partialorder %v826_v62, 1.0  ;;  %v1019_v18 = vmul.f32 0.95, %v827_v4 }
 0x14d   : > { %v1138_v34 = vsub.f32 %v1074_v28, %v946_v22  ;;  %v682_v35 = vadd.f32 %v681_v31, %v3029_v15  ;;  %v683_v37 = vpop.f32.mrb[27].mxu0  ;;  %vm2339_vm0 = vmpackc.low %vm1201_vm14, %vm1199_vm13  ;;  %v954_v22 = vsel %vm890_vm11, 1.0, %v2631_v1  ;;  %vm892_vm13 = vcmp.gt.f32.partialorder %v828_v12, 1.0  ;;  %v834_v62 = vld [vmem:[%s2799_s30 + $0x140] sm:$0xff]  ;;  %v835_v4 = vld [vmem:[%s2799_s30 + $0x148] sm:$0xff] }
 0x14e   : > { %v1139_v39 = vsub.f32 %v1075_v30, %v947_v24  ;;  %v684_v40 = vadd.f32 %v683_v37, %v3033_v17  ;;  %2340 = vmatprep.mubr.msk.bf16.mxu1 %vm2339_vm0, %v2632_v7  ;;  %v955_v24 = vsel %vm891_vm12, 1.0, %v2631_v1  ;;  %vm893_vm0 = vcmp.gt.f32.partialorder %v829_v19, 1.0 }
 0x14f   : > { %1330 = vst [vmem:[%s3049_s21 + $0xc0] sm:$0xff] %v1138_v34  ;;  %v1076_v41 = vadd.f32 %v1012_v27, %v682_v35  ;;  %2342 = vmatmul.mubr.msk.bf16.gmra.mrb[8].mxu1 %vm3198_vm15, %v2632_v7  ;;  %vm1202_vm4 = vcmp.gt.f32.partialorder %v1138_v34, 1.0  ;;  %v1020_v27 = vmul.f32 0.95, %v828_v12  ;;  %v836_v12 = vld [vmem:[%s2799_s30 + $0x150] sm:$0xff] }
 0x150   : > { %1331 = vst [vmem:[%s3049_s21 + $0xc8] sm:$0xff] %v1139_v39  ;;  %v1077_v45 = vadd.f32 %v1013_v29, %v684_v40  ;;  %v687_v46 = vpop.f32.mrb[28].mxu0  ;;  %vm1203_vm7 = vcmp.gt.f32.partialorder %v1139_v39, 1.0  ;;  %v1021_v29 = vmul.f32 0.95, %v829_v19  ;;  %v837_v19 = vld [vmem:[%s2799_s30 + $0x158] sm:$0xff] }
 0x151   : > { %v1140_v49 = vsub.f32 %v1076_v41, %v948_v36  ;;  %v688_v50 = vadd.f32 %v687_v46, %v3029_v15  ;;  %v689_v52 = vpop.f32.mrb[29].mxu0  ;;  %v956_v36 = vsel %vm892_vm13, 1.0, %v2631_v1 }
 0x152   : > { %v1141_v54 = vsub.f32 %v1077_v45, %v949_v42  ;;  %v690_v55 = vadd.f32 %v689_v52, %v3033_v17  ;;  %v957_v42 = vsel %vm893_vm0, 1.0, %v2631_v1  ;;  %vm899_vm0 = vcmp.gt.f32.partialorder %v835_v4, 1.0 }
 0x153   : > { %1332 = vst [vmem:[%s3049_s21 + $0xd0] sm:$0xff] %v1140_v49  ;;  %v1078_v57 = vadd.f32 %v1014_v43, %v688_v50  ;;  %vm1204_vm5 = vcmp.gt.f32.partialorder %v1140_v49, 1.0  ;;  %v1022_v43 = vmul.f32 0.95, %v830_v33 }
 0x154   : > { %1333 = vst [vmem:[%s3049_s21 + $0xd8] sm:$0xff] %v1141_v54  ;;  %v1079_v59 = vadd.f32 %v1015_v47, %v690_v55  ;;  %v693_v60 = vpop.f32.mrb[30].mxu0  ;;  %vm1205_vm8 = vcmp.gt.f32.partialorder %v1141_v54, 1.0  ;;  %vm3225_vm9 = vmpackc.low %vm1204_vm5, %vm1202_vm4  ;;  %vm894_vm5 = vcmp.gt.f32.partialorder %v830_v33, 1.0  ;;  %v1023_v47 = vmul.f32 0.95, %v831_v38 }
 0x155   : > { %v1142_v63 = vsub.f32 %v1078_v57, %v950_v51  ;;  %v694_v0 = vadd.f32 %v693_v60, %v3029_v15  ;;  %v695_v3 = vpop.f32.mrb[31].mxu0  ;;  %vm2343_vm10 = vmpackc.low %vm1205_vm8, %vm1203_vm7  ;;  %v958_v51 = vsel %vm894_vm5, 1.0, %v2631_v1  ;;  %vm896_vm7 = vcmp.gt.f32.partialorder %v832_v44, 1.0  ;;  %v838_v33 = vld [vmem:[%s2799_s30 + $0x160] sm:$0xff]  ;;  %v839_v38 = vld [vmem:[%s2799_s30 + $0x168] sm:$0xff] }
 0x156   : > { %v1143_v5 = vsub.f32 %v1079_v59, %v951_v53  ;;  %v696_v6 = vadd.f32 %v695_v3, %v3033_v17  ;;  %2344 = vmatprep.mubr.msk.bf16.mxu1 %vm2343_vm10, %v2632_v7  ;;  %v959_v53 = vsel %vm895_vm6, 1.0, %v2631_v1  ;;  %vm897_vm10 = vcmp.gt.f32.partialorder %v833_v48, 1.0 }
 0x157   : > { %1334 = vst [vmem:[%s3049_s21 + $0xe0] sm:$0xff] %v1142_v63  ;;  %v1080_v8 = vadd.f32 %v1016_v56, %v694_v0  ;;  %2346 = vmatmul.mubr.msk.bf16.gmra.mrb[12].mxu1 %vm3225_vm9, %v2632_v7  ;;  %vm1206_vm14 = vcmp.gt.f32.partialorder %v1142_v63, 1.0  ;;  %v1024_v56 = vmul.f32 0.95, %v832_v44  ;;  %v840_v44 = vld [vmem:[%s2799_s30 + $0x170] sm:$0xff] }
 0x158   : > { %1335 = vst [vmem:[%s3049_s21 + $0xe8] sm:$0xff] %v1143_v5  ;;  %v1081_v14 = vadd.f32 %v1017_v58, %v696_v6  ;;  %v699_v16 = vpop.f32.mrb[32].mxu0  ;;  %vm1207_vm1 = vcmp.gt.f32.partialorder %v1143_v5, 1.0  ;;  %v1025_v58 = vmul.f32 0.95, %v833_v48  ;;  %v841_v48 = vld [vmem:[%s2799_s30 + $0x178] sm:$0xff] }
 0x159   : > { %v1144_v20 = vsub.f32 %v1080_v8, %v952_v2  ;;  %v700_v21 = vadd.f32 %v699_v16, %v3029_v15  ;;  %v701_v23 = vpop.f32.mrb[33].mxu0  ;;  %v960_v2 = vsel %vm896_vm7, 1.0, %v2631_v1 }
 0x15a   : > { %v1145_v25 = vsub.f32 %v1081_v14, %v953_v9  ;;  %v702_v26 = vadd.f32 %v701_v23, %v3033_v17  ;;  %v961_v9 = vsel %vm897_vm10, 1.0, %v2631_v1  ;;  %vm903_vm10 = vcmp.gt.f32.partialorder %v839_v38, 1.0 }
 0x15b   : > { %1336 = vst [vmem:[%s3049_s21 + $0xf0] sm:$0xff] %v1144_v20  ;;  %v1082_v28 = vadd.f32 %v1018_v10, %v700_v21  ;;  %vm1208_vm15 = vcmp.gt.f32.partialorder %v1144_v20, 1.0  ;;  %v1026_v10 = vmul.f32 0.95, %v834_v62 }
 0x15c   : > { %1337 = vst [vmem:[%s3049_s21 + $0xf8] sm:$0xff] %v1145_v25  ;;  %v1083_v30 = vadd.f32 %v1019_v18, %v702_v26  ;;  %v705_v31 = vpop.f32.mrb[34].mxu0  ;;  %vm1209_vm2 = vcmp.gt.f32.partialorder %v1145_v25, 1.0  ;;  %vm3252_vm3 = vmpackc.low %vm1208_vm15, %vm1206_vm14  ;;  %vm898_vm15 = vcmp.gt.f32.partialorder %v834_v62, 1.0  ;;  %v1027_v18 = vmul.f32 0.95, %v835_v4 }
 0x15d   : > { %v1146_v34 = vsub.f32 %v1082_v28, %v954_v22  ;;  %v706_v35 = vadd.f32 %v705_v31, %v3029_v15  ;;  %v707_v37 = vpop.f32.mrb[35].mxu0  ;;  %vm2347_vm4 = vmpackc.low %vm1209_vm2, %vm1207_vm1  ;;  %v962_v22 = vsel %vm898_vm15, 1.0, %v2631_v1  ;;  %vm900_vm1 = vcmp.gt.f32.partialorder %v836_v12, 1.0  ;;  %v842_v62 = vld [vmem:[%s2799_s30 + $0x180] sm:$0xff]  ;;  %v843_v4 = vld [vmem:[%s2799_s30 + $0x188] sm:$0xff] }
 0x15e   : > { %v1147_v39 = vsub.f32 %v1083_v30, %v955_v24  ;;  %v708_v40 = vadd.f32 %v707_v37, %v3033_v17  ;;  %2348 = vmatprep.mubr.msk.bf16.mxu1 %vm2347_vm4, %v2632_v7  ;;  %v963_v24 = vsel %vm899_vm0, 1.0, %v2631_v1  ;;  %vm901_vm4 = vcmp.gt.f32.partialorder %v837_v19, 1.0 }
 0x15f   : > { %1338 = vst [vmem:[%s3049_s21 + $0x100] sm:$0xff] %v1146_v34  ;;  %v1084_v41 = vadd.f32 %v1020_v27, %v706_v35  ;;  %2350 = vmatmul.mubr.msk.bf16.gmra.mrb[16].mxu1 %vm3252_vm3, %v2632_v7  ;;  %vm1210_vm8 = vcmp.gt.f32.partialorder %v1146_v34, 1.0  ;;  %v1028_v27 = vmul.f32 0.95, %v836_v12  ;;  %v844_v12 = vld [vmem:[%s2799_s30 + $0x190] sm:$0xff] }
 0x160   : > { %1339 = vst [vmem:[%s3049_s21 + $0x108] sm:$0xff] %v1147_v39  ;;  %v1085_v45 = vadd.f32 %v1021_v29, %v708_v40  ;;  %v711_v46 = vpop.f32.mrb[36].mxu0  ;;  %vm1211_vm11 = vcmp.gt.f32.partialorder %v1147_v39, 1.0  ;;  %v1029_v29 = vmul.f32 0.95, %v837_v19  ;;  %v845_v19 = vld [vmem:[%s2799_s30 + $0x198] sm:$0xff] }
 0x161   : > { %v1148_v49 = vsub.f32 %v1084_v41, %v956_v36  ;;  %v712_v50 = vadd.f32 %v711_v46, %v3029_v15  ;;  %v713_v52 = vpop.f32.mrb[37].mxu0  ;;  %v964_v36 = vsel %vm900_vm1, 1.0, %v2631_v1 }
 0x162   : > { %v1149_v54 = vsub.f32 %v1085_v45, %v957_v42  ;;  %v714_v55 = vadd.f32 %v713_v52, %v3033_v17  ;;  %v965_v42 = vsel %vm901_vm4, 1.0, %v2631_v1  ;;  %vm907_vm4 = vcmp.gt.f32.partialorder %v843_v4, 1.0 }
 0x163   : > { %1340 = vst [vmem:[%s3049_s21 + $0x110] sm:$0xff] %v1148_v49  ;;  %v1086_v57 = vadd.f32 %v1022_v43, %v712_v50  ;;  %vm1212_vm9 = vcmp.gt.f32.partialorder %v1148_v49, 1.0  ;;  %v1030_v43 = vmul.f32 0.95, %v838_v33 }
 0x164   : > { %1341 = vst [vmem:[%s3049_s21 + $0x118] sm:$0xff] %v1149_v54  ;;  %v1087_v59 = vadd.f32 %v1023_v47, %v714_v55  ;;  %v717_v60 = vpop.f32.mrb[38].mxu0  ;;  %vm1213_vm12 = vcmp.gt.f32.partialorder %v1149_v54, 1.0  ;;  %vm3279_vm13 = vmpackc.low %vm1212_vm9, %vm1210_vm8  ;;  %vm902_vm9 = vcmp.gt.f32.partialorder %v838_v33, 1.0  ;;  %v1031_v47 = vmul.f32 0.95, %v839_v38 }
 0x165   : > { %v1150_v63 = vsub.f32 %v1086_v57, %v958_v51  ;;  %v718_v0 = vadd.f32 %v717_v60, %v3029_v15  ;;  %v719_v3 = vpop.f32.mrb[39].mxu0  ;;  %vm2351_vm14 = vmpackc.low %vm1213_vm12, %vm1211_vm11  ;;  %v966_v51 = vsel %vm902_vm9, 1.0, %v2631_v1  ;;  %vm904_vm11 = vcmp.gt.f32.partialorder %v840_v44, 1.0  ;;  %v846_v33 = vld [vmem:[%s2799_s30 + $0x1a0] sm:$0xff]  ;;  %v847_v38 = vld [vmem:[%s2799_s30 + $0x1a8] sm:$0xff] }
 0x166   : > { %v1151_v5 = vsub.f32 %v1087_v59, %v959_v53  ;;  %v720_v6 = vadd.f32 %v719_v3, %v3033_v17  ;;  %2352 = vmatprep.mubr.msk.bf16.mxu1 %vm2351_vm14, %v2632_v7  ;;  %v967_v53 = vsel %vm903_vm10, 1.0, %v2631_v1  ;;  %vm905_vm14 = vcmp.gt.f32.partialorder %v841_v48, 1.0 }
 0x167   : > { %1342 = vst [vmem:[%s3049_s21 + $0x120] sm:$0xff] %v1150_v63  ;;  %v1088_v8 = vadd.f32 %v1024_v56, %v718_v0  ;;  %2354 = vmatmul.mubr.msk.bf16.gmra.mrb[20].mxu1 %vm3279_vm13, %v2632_v7  ;;  %vm1214_vm2 = vcmp.gt.f32.partialorder %v1150_v63, 1.0  ;;  %v1032_v56 = vmul.f32 0.95, %v840_v44  ;;  %v848_v44 = vld [vmem:[%s2799_s30 + $0x1b0] sm:$0xff] }
 0x168   : > { %1343 = vst [vmem:[%s3049_s21 + $0x128] sm:$0xff] %v1151_v5  ;;  %v1089_v14 = vadd.f32 %v1025_v58, %v720_v6  ;;  %v723_v16 = vpop.f32.mrb[40].mxu0  ;;  %vm1215_vm5 = vcmp.gt.f32.partialorder %v1151_v5, 1.0  ;;  %v1033_v58 = vmul.f32 0.95, %v841_v48  ;;  %v849_v48 = vld [vmem:[%s2799_s30 + $0x1b8] sm:$0xff] }
 0x169   : > { %v1152_v20 = vsub.f32 %v1088_v8, %v960_v2  ;;  %v724_v21 = vadd.f32 %v723_v16, %v3029_v15  ;;  %v725_v23 = vpop.f32.mrb[41].mxu0  ;;  %v968_v2 = vsel %vm904_vm11, 1.0, %v2631_v1 }
 0x16a   : > { %v1153_v25 = vsub.f32 %v1089_v14, %v961_v9  ;;  %v726_v26 = vadd.f32 %v725_v23, %v3033_v17  ;;  %v969_v9 = vsel %vm905_vm14, 1.0, %v2631_v1  ;;  %vm911_vm14 = vcmp.gt.f32.partialorder %v847_v38, 1.0 }
 0x16b   : > { %1344 = vst [vmem:[%s3049_s21 + $0x130] sm:$0xff] %v1152_v20  ;;  %v1090_v28 = vadd.f32 %v1026_v10, %v724_v21  ;;  %vm1216_vm3 = vcmp.gt.f32.partialorder %v1152_v20, 1.0  ;;  %v1034_v10 = vmul.f32 0.95, %v842_v62 }
 0x16c   : > { %1345 = vst [vmem:[%s3049_s21 + $0x138] sm:$0xff] %v1153_v25  ;;  %v1091_v30 = vadd.f32 %v1027_v18, %v726_v26  ;;  %v729_v31 = vpop.f32.mrb[42].mxu0  ;;  %vm1217_vm6 = vcmp.gt.f32.partialorder %v1153_v25, 1.0  ;;  %vm3306_vm7 = vmpackc.low %vm1216_vm3, %vm1214_vm2  ;;  %vm906_vm3 = vcmp.gt.f32.partialorder %v842_v62, 1.0  ;;  %v1035_v18 = vmul.f32 0.95, %v843_v4 }
 0x16d   : > { %v1154_v34 = vsub.f32 %v1090_v28, %v962_v22  ;;  %v730_v35 = vadd.f32 %v729_v31, %v3029_v15  ;;  %v731_v37 = vpop.f32.mrb[43].mxu0  ;;  %vm2355_vm8 = vmpackc.low %vm1217_vm6, %vm1215_vm5  ;;  %v970_v22 = vsel %vm906_vm3, 1.0, %v2631_v1  ;;  %vm908_vm5 = vcmp.gt.f32.partialorder %v844_v12, 1.0  ;;  %v850_v62 = vld [vmem:[%s2799_s30 + $0x1c0] sm:$0xff]  ;;  %v851_v4 = vld [vmem:[%s2799_s30 + $0x1c8] sm:$0xff] }
 0x16e   : > { %v1155_v39 = vsub.f32 %v1091_v30, %v963_v24  ;;  %v732_v40 = vadd.f32 %v731_v37, %v3033_v17  ;;  %2356 = vmatprep.mubr.msk.bf16.mxu1 %vm2355_vm8, %v2632_v7  ;;  %v971_v24 = vsel %vm907_vm4, 1.0, %v2631_v1  ;;  %vm909_vm8 = vcmp.gt.f32.partialorder %v845_v19, 1.0 }
 0x16f   : > { %1346 = vst [vmem:[%s3049_s21 + $0x140] sm:$0xff] %v1154_v34  ;;  %v1092_v41 = vadd.f32 %v1028_v27, %v730_v35  ;;  %2358 = vmatmul.mubr.msk.bf16.gmra.mrb[24].mxu1 %vm3306_vm7, %v2632_v7  ;;  %vm1218_vm12 = vcmp.gt.f32.partialorder %v1154_v34, 1.0  ;;  %v1036_v27 = vmul.f32 0.95, %v844_v12  ;;  %v852_v12 = vld [vmem:[%s2799_s30 + $0x1d0] sm:$0xff] }
 0x170   : > { %1347 = vst [vmem:[%s3049_s21 + $0x148] sm:$0xff] %v1155_v39  ;;  %v1093_v45 = vadd.f32 %v1029_v29, %v732_v40  ;;  %v735_v46 = vpop.f32.mrb[44].mxu0  ;;  %vm1219_vm15 = vcmp.gt.f32.partialorder %v1155_v39, 1.0  ;;  %v1037_v29 = vmul.f32 0.95, %v845_v19  ;;  %v853_v19 = vld [vmem:[%s2799_s30 + $0x1d8] sm:$0xff] }
 0x171   : > { %v1156_v49 = vsub.f32 %v1092_v41, %v964_v36  ;;  %v736_v50 = vadd.f32 %v735_v46, %v3029_v15  ;;  %v737_v52 = vpop.f32.mrb[45].mxu0  ;;  %v972_v36 = vsel %vm908_vm5, 1.0, %v2631_v1 }
 0x172   : > { %v1157_v54 = vsub.f32 %v1093_v45, %v965_v42  ;;  %v738_v55 = vadd.f32 %v737_v52, %v3033_v17  ;;  %v973_v42 = vsel %vm909_vm8, 1.0, %v2631_v1  ;;  %vm915_vm8 = vcmp.gt.f32.partialorder %v851_v4, 1.0 }
 0x173   : > { %1348 = vst [vmem:[%s3049_s21 + $0x150] sm:$0xff] %v1156_v49  ;;  %v1094_v57 = vadd.f32 %v1030_v43, %v736_v50  ;;  %vm1220_vm13 = vcmp.gt.f32.partialorder %v1156_v49, 1.0  ;;  %v1038_v43 = vmul.f32 0.95, %v846_v33 }
 0x174   : > { %1349 = vst [vmem:[%s3049_s21 + $0x158] sm:$0xff] %v1157_v54  ;;  %v1095_v59 = vadd.f32 %v1031_v47, %v738_v55  ;;  %v741_v60 = vpop.f32.mrb[46].mxu0  ;;  %vm1221_vm0 = vcmp.gt.f32.partialorder %v1157_v54, 1.0  ;;  %vm3333_vm1 = vmpackc.low %vm1220_vm13, %vm1218_vm12  ;;  %vm910_vm13 = vcmp.gt.f32.partialorder %v846_v33, 1.0  ;;  %v1039_v47 = vmul.f32 0.95, %v847_v38 }
 0x175   : > { %v1158_v63 = vsub.f32 %v1094_v57, %v966_v51  ;;  %v742_v0 = vadd.f32 %v741_v60, %v3029_v15  ;;  %v743_v3 = vpop.f32.mrb[47].mxu0  ;;  %vm2359_vm2 = vmpackc.low %vm1221_vm0, %vm1219_vm15  ;;  %v974_v51 = vsel %vm910_vm13, 1.0, %v2631_v1  ;;  %vm912_vm15 = vcmp.gt.f32.partialorder %v848_v44, 1.0  ;;  %v854_v33 = vld [vmem:[%s2799_s30 + $0x1e0] sm:$0xff]  ;;  %v855_v38 = vld [vmem:[%s2799_s30 + $0x1e8] sm:$0xff] }
 0x176   : > { %v1159_v5 = vsub.f32 %v1095_v59, %v967_v53  ;;  %v744_v6 = vadd.f32 %v743_v3, %v3033_v17  ;;  %2360 = vmatprep.mubr.msk.bf16.mxu1 %vm2359_vm2, %v2632_v7  ;;  %v975_v53 = vsel %vm911_vm14, 1.0, %v2631_v1  ;;  %vm913_vm2 = vcmp.gt.f32.partialorder %v849_v48, 1.0 }
 0x177   : > { %1350 = vst [vmem:[%s3049_s21 + $0x160] sm:$0xff] %v1158_v63  ;;  %v1096_v8 = vadd.f32 %v1032_v56, %v742_v0  ;;  %2362 = vmatmul.mubr.msk.bf16.gmra.mrb[28].mxu1 %vm3333_vm1, %v2632_v7  ;;  %vm1222_vm6 = vcmp.gt.f32.partialorder %v1158_v63, 1.0  ;;  %v1040_v56 = vmul.f32 0.95, %v848_v44  ;;  %v856_v44 = vld [vmem:[%s2799_s30 + $0x1f0] sm:$0xff] }
 0x178   : > { %1351 = vst [vmem:[%s3049_s21 + $0x168] sm:$0xff] %v1159_v5  ;;  %v1097_v14 = vadd.f32 %v1033_v58, %v744_v6  ;;  %v747_v16 = vpop.f32.mrb[48].mxu0  ;;  %vm1223_vm9 = vcmp.gt.f32.partialorder %v1159_v5, 1.0  ;;  %v1041_v58 = vmul.f32 0.95, %v849_v48 }
 0x179   : > { %v1160_v20 = vsub.f32 %v1096_v8, %v968_v2  ;;  %v748_v21 = vadd.f32 %v747_v16, %v3029_v15  ;;  %v749_v23 = vpop.f32.mrb[49].mxu0  ;;  %v976_v2 = vsel %vm912_vm15, 1.0, %v2631_v1  ;;  %v1047_v48 = vmul.f32 0.95, %v855_v38 }
 0x17a   : > { %v1161_v25 = vsub.f32 %v1097_v14, %v969_v9  ;;  %v750_v26 = vadd.f32 %v749_v23, %v3033_v17  ;;  %v977_v9 = vsel %vm913_vm2, 1.0, %v2631_v1  ;;  %vm919_vm2 = vcmp.gt.f32.partialorder %v855_v38, 1.0 }
 0x17b   : > { %1352 = vst [vmem:[%s3049_s21 + $0x170] sm:$0xff] %v1160_v20  ;;  %v1098_v28 = vadd.f32 %v1034_v10, %v748_v21  ;;  %vm1224_vm7 = vcmp.gt.f32.partialorder %v1160_v20, 1.0  ;;  %v1042_v10 = vmul.f32 0.95, %v850_v62 }
 0x17c   : > { %1353 = vst [vmem:[%s3049_s21 + $0x178] sm:$0xff] %v1161_v25  ;;  %v1099_v30 = vadd.f32 %v1035_v18, %v750_v26  ;;  %v753_v31 = vpop.f32.mrb[50].mxu0  ;;  %vm1225_vm10 = vcmp.gt.f32.partialorder %v1161_v25, 1.0  ;;  %vm3360_vm11 = vmpackc.low %vm1224_vm7, %vm1222_vm6  ;;  %vm914_vm7 = vcmp.gt.f32.partialorder %v850_v62, 1.0  ;;  %v1043_v18 = vmul.f32 0.95, %v851_v4 }
 0x17d   : > { %v1162_v34 = vsub.f32 %v1098_v28, %v970_v22  ;;  %v754_v35 = vadd.f32 %v753_v31, %v3029_v15  ;;  %v755_v37 = vpop.f32.mrb[51].mxu0  ;;  %vm2363_vm12 = vmpackc.low %vm1225_vm10, %vm1223_vm9  ;;  %v978_v22 = vsel %vm914_vm7, 1.0, %v2631_v1  ;;  %vm916_vm9 = vcmp.gt.f32.partialorder %v852_v12, 1.0 }
 0x17e   : > { %v1163_v39 = vsub.f32 %v1099_v30, %v971_v24  ;;  %v756_v40 = vadd.f32 %v755_v37, %v3033_v17  ;;  %2364 = vmatprep.mubr.msk.bf16.mxu1 %vm2363_vm12, %v2632_v7  ;;  %v979_v24 = vsel %vm915_vm8, 1.0, %v2631_v1  ;;  %vm917_vm12 = vcmp.gt.f32.partialorder %v853_v19, 1.0 }
 0x17f   : > { %1354 = vst [vmem:[%s3049_s21 + $0x180] sm:$0xff] %v1162_v34  ;;  %v1100_v41 = vadd.f32 %v1036_v27, %v754_v35  ;;  %2366 = vmatmul.mubr.msk.bf16.gmra.mrb[32].mxu1 %vm3360_vm11, %v2632_v7  ;;  %vm1226_vm0 = vcmp.gt.f32.partialorder %v1162_v34, 1.0  ;;  %v1044_v27 = vmul.f32 0.95, %v852_v12 }
 0x180   : > { %1355 = vst [vmem:[%s3049_s21 + $0x188] sm:$0xff] %v1163_v39  ;;  %v1101_v45 = vadd.f32 %v1037_v29, %v756_v40  ;;  %v759_v46 = vpop.f32.mrb[52].mxu0  ;;  %vm1227_vm3 = vcmp.gt.f32.partialorder %v1163_v39, 1.0  ;;  %v1045_v29 = vmul.f32 0.95, %v853_v19 }
 0x181   : > { %v1164_v49 = vsub.f32 %v1100_v41, %v972_v36  ;;  %v760_v50 = vadd.f32 %v759_v46, %v3029_v15  ;;  %v761_v52 = vpop.f32.mrb[53].mxu0  ;;  %v980_v36 = vsel %vm916_vm9, 1.0, %v2631_v1 }
 0x182   : > { %v1165_v54 = vsub.f32 %v1101_v45, %v973_v42  ;;  %v762_v55 = vadd.f32 %v761_v52, %v3033_v17  ;;  %v981_v42 = vsel %vm917_vm12, 1.0, %v2631_v1  ;;  %v857_v45 = vld [vmem:[%s2799_s30 + $0x1f8] sm:$0xff] }
 0x183   : > { %1356 = vst [vmem:[%s3049_s21 + $0x190] sm:$0xff] %v1164_v49  ;;  %v1102_v57 = vadd.f32 %v1038_v43, %v760_v50  ;;  %vm1228_vm1 = vcmp.gt.f32.partialorder %v1164_v49, 1.0  ;;  %v1046_v43 = vmul.f32 0.95, %v854_v33 }
 0x184   : > { %1357 = vst [vmem:[%s3049_s21 + $0x198] sm:$0xff] %v1165_v54  ;;  %v1103_v59 = vadd.f32 %v1039_v47, %v762_v55  ;;  %v765_v60 = vpop.f32.mrb[54].mxu0  ;;  %vm1229_vm4 = vcmp.gt.f32.partialorder %v1165_v54, 1.0  ;;  %vm3387_vm5 = vmpackc.low %vm1228_vm1, %vm1226_vm0  ;;  %vm918_vm1 = vcmp.gt.f32.partialorder %v854_v33, 1.0 }
 0x185   : > { %v1166_v63 = vsub.f32 %v1102_v57, %v974_v51  ;;  %v766_v0 = vadd.f32 %v765_v60, %v3029_v15  ;;  %v767_v3 = vpop.f32.mrb[55].mxu0  ;;  %vm2367_vm6 = vmpackc.low %vm1229_vm4, %vm1227_vm3  ;;  %v982_v51 = vsel %vm918_vm1, 1.0, %v2631_v1  ;;  %v1049_v57 = vmul.f32 0.95, %v857_v45 }
 0x186   : > { %v1167_v5 = vsub.f32 %v1103_v59, %v975_v53  ;;  %v768_v6 = vadd.f32 %v767_v3, %v3033_v17  ;;  %2368 = vmatprep.mubr.msk.bf16.mxu1 %vm2367_vm6, %v2632_v7  ;;  %v983_v53 = vsel %vm919_vm2, 1.0, %v2631_v1  ;;  %vm920_vm3 = vcmp.gt.f32.partialorder %v856_v44, 1.0 }
 0x187   : > { %1358 = vst [vmem:[%s3049_s21 + $0x1a0] sm:$0xff] %v1166_v63  ;;  %v1104_v8 = vadd.f32 %v1040_v56, %v766_v0  ;;  %2370 = vmatmul.mubr.msk.bf16.gmra.mrb[36].mxu1 %vm3387_vm5, %v2632_v7  ;;  %vm1230_vm10 = vcmp.gt.f32.partialorder %v1166_v63, 1.0  ;;  %v1048_v56 = vmul.f32 0.95, %v856_v44  ;;  %vm921_vm6 = vcmp.gt.f32.partialorder %v857_v45, 1.0 }
 0x188   : > { %1359 = vst [vmem:[%s3049_s21 + $0x1a8] sm:$0xff] %v1167_v5  ;;  %v1105_v14 = vadd.f32 %v1041_v58, %v768_v6  ;;  %v771_v16 = vpop.f32.mrb[56].mxu0  ;;  %vm1231_vm13 = vcmp.gt.f32.partialorder %v1167_v5, 1.0  ;;  %v985_v5 = vsel %vm921_vm6, 1.0, %v2631_v1 }
 0x189   : > { %v1168_v20 = vsub.f32 %v1104_v8, %v976_v2  ;;  %v772_v21 = vadd.f32 %v771_v16, %v3029_v15  ;;  %v773_v23 = vpop.f32.mrb[57].mxu0  ;;  %v984_v2 = vsel %vm920_vm3, 1.0, %v2631_v1  ;;  %v1434_v1 = vld [vmem:[%s3760_s5] sm:$0x3] }
 0x18a   : > { %v1169_v25 = vsub.f32 %v1105_v14, %v977_v9  ;;  %v774_v26 = vadd.f32 %v773_v23, %v3033_v17  ;;  %v3460_v9 = vrot.slane %v1434_v1, %v3025_v13 }
 0x18b   : > { %1360 = vst [vmem:[%s3049_s21 + $0x1b0] sm:$0xff] %v1168_v20  ;;  %v1106_v28 = vadd.f32 %v1042_v10, %v772_v21  ;;  %vm1232_vm11 = vcmp.gt.f32.partialorder %v1168_v20, 1.0  ;;  %v1863_v10 = vld [vmem:[%s3761_s6] sm:$0x3] }
 0x18c   : > { %1361 = vst [vmem:[%s3049_s21 + $0x1b8] sm:$0xff] %v1169_v25  ;;  %v1107_v30 = vadd.f32 %v1043_v18, %v774_v26  ;;  %v777_v31 = vpop.f32.mrb[58].mxu0  ;;  %vm1233_vm14 = vcmp.gt.f32.partialorder %v1169_v25, 1.0  ;;  %vm3414_vm15 = vmpackc.low %vm1232_vm11, %vm1230_vm10  ;;  %v3471_v20 = vrot.slane %v1863_v10, %v3025_v13 }
 0x18d   : > { %v1170_v34 = vsub.f32 %v1106_v28, %v978_v22  ;;  %v778_v35 = vadd.f32 %v777_v31, %v3029_v15  ;;  %v779_v37 = vpop.f32.mrb[59].mxu0  ;;  %vm2371_vm0 = vmpackc.low %vm1233_vm14, %vm1231_vm13 }
 0x18e   : > { %v1171_v39 = vsub.f32 %v1107_v30, %v979_v24  ;;  %v780_v40 = vadd.f32 %v779_v37, %v3033_v17  ;;  %2372 = vmatprep.mubr.msk.bf16.mxu1 %vm2371_vm0, %v2632_v7 }
 0x18f   : > { %1362 = vst [vmem:[%s3049_s21 + $0x1c0] sm:$0xff] %v1170_v34  ;;  %v1108_v41 = vadd.f32 %v1044_v27, %v778_v35  ;;  %2374 = vmatmul.mubr.msk.bf16.gmra.mrb[40].mxu1 %vm3414_vm15, %v2632_v7  ;;  %vm1234_vm4 = vcmp.gt.f32.partialorder %v1170_v34, 1.0 }
 0x190   : > { %1363 = vst [vmem:[%s3049_s21 + $0x1c8] sm:$0xff] %v1171_v39  ;;  %v1109_v46 = vadd.f32 %v1045_v29, %v780_v40  ;;  %v783_v47 = vpop.f32.mrb[60].mxu0  ;;  %vm1235_vm7 = vcmp.gt.f32.partialorder %v1171_v39, 1.0 }
 0x191   : > { %v1172_v49 = vsub.f32 %v1108_v41, %v980_v36  ;;  %v784_v50 = vadd.f32 %v783_v47, %v3029_v15  ;;  %v785_v52 = vpop.f32.mrb[61].mxu0 }
 0x192   : > { %v1173_v54 = vsub.f32 %v1109_v46, %v981_v42  ;;  %v786_v55 = vadd.f32 %v785_v52, %v3033_v17 }
 0x193   : > { %1364 = vst [vmem:[%s3049_s21 + $0x1d0] sm:$0xff] %v1172_v49  ;;  %v1110_v58 = vadd.f32 %v1046_v43, %v784_v50  ;;  %vm1236_vm5 = vcmp.gt.f32.partialorder %v1172_v49, 1.0 }
 0x194   : > { %1365 = vst [vmem:[%s3049_s21 + $0x1d8] sm:$0xff] %v1173_v54  ;;  %v1111_v59 = vadd.f32 %v1047_v48, %v786_v55  ;;  %v789_v60 = vpop.f32.mrb[62].mxu0  ;;  %vm1237_vm8 = vcmp.gt.f32.partialorder %v1173_v54, 1.0  ;;  %vm2377_vm9 = vmpackc.low %vm1236_vm5, %vm1234_vm4 }
 0x195   : > { %v1174_v61 = vsub.f32 %v1110_v58, %v982_v51  ;;  %v790_v62 = vadd.f32 %v789_v60, %v3029_v15  ;;  %v791_v63 = vpop.f32.mrb[63].mxu0  ;;  %vm2375_vm10 = vmpackc.low %vm1237_vm8, %vm1235_vm7 }
 0x196   : > { %v1175_v0 = vsub.f32 %v1111_v59, %v983_v53  ;;  %v792_v3 = vadd.f32 %v791_v63, %v3033_v17  ;;  %2376 = vmatprep.mubr.msk.bf16.mxu1 %vm2375_vm10, %v2632_v7  ;;  %v3457_v17 = vrot.slane %v1434_v1, %v3020_v11 }
 0x197   : > { %1366 = vst [vmem:[%s3049_s21 + $0x1e0] sm:$0xff] %v1174_v61  ;;  %v1112_v4 = vadd.f32 %v1048_v56, %v790_v62  ;;  %2378 = vmatmul.mubr.msk.bf16.gmra.mrb[44].mxu1 %vm2377_vm9, %v2632_v7  ;;  %vm1238_vm11 = vcmp.gt.f32.partialorder %v1174_v61, 1.0 }
 0x198   : > { %1367 = vst [vmem:[%s3049_s21 + $0x1e8] sm:$0xff] %v1175_v0  ;;  %v1113_v6 = vadd.f32 %v1049_v57, %v792_v3  ;;  %vm1239_vm13 = vcmp.gt.f32.partialorder %v1175_v0, 1.0 }
 0x199   : > { %v1176_v8 = vsub.f32 %v1112_v4, %v984_v2 }
 0x19a   : > { %v1177_v15 = vsub.f32 %v1113_v6, %v985_v5 }
 0x19b   : > { %1368 = vst [vmem:[%s3049_s21 + $0x1f0] sm:$0xff] %v1176_v8  ;;  %vm1240_vm12 = vcmp.gt.f32.partialorder %v1176_v8, 1.0 }
 0x19c   : > { %1369 = vst [vmem:[%s3049_s21 + $0x1f8] sm:$0xff] %v1177_v15  ;;  %vm1241_vm14 = vcmp.gt.f32.partialorder %v1177_v15, 1.0  ;;  %vm2381_vm15 = vmpackc.low %vm1240_vm12, %vm1238_vm11  ;;  %s2564_s21 = sshll.u32 %s2633_s7, 4  ;;  %s2565_s21 = int_to_ptr.vmem [resolvable:$false] %s2564_s21 }
 0x19d   : > { %vm2379_vm0 = vmpackc.low %vm1241_vm14, %vm1239_vm13  ;;  %s2566_s30 = scalar_lea.vmem %s2565_s21, 16384  ;;  %p2567_p10 = scmp.lt.s32.totalorder %s3606_s28, %s2565_s21 }
 0x19e   : > { %2380 = vmatprep.mubr.msk.bf16.mxu1 %vm2379_vm0, %v2632_v7  ;;  %p2568_p0 = scmp.lt.s32.totalorder %s2566_s30, %s2560_s19 }
 0x19f   : > { %2382 = vmatmul.mubr.msk.bf16.gmra.mrb[48].mxu1 %vm2381_vm15, %v2632_v7  ;;  %v3467_v7 = vrot.slane %v1863_v10, %v3020_v11 }
 0x1a0   : > { %p2569_p2 = por %p2568_p0, %p2567_p10 }
 0x1a2   : > { %p2570_p4 = pnand %p2569_p2, %p2563_p8 }
 0x1fa   : > { %v1640_v12 = vpop.f32.mrb[64].mxu0 }
 0x1fb   : > { %v1641_v14 = vadd.f32 %v1640_v12, %v3457_v17  ;;  %v1642_v16 = vpop.f32.mrb[65].mxu0 }
 0x1fc   : > { %v1643_v18 = vadd.f32 %v1642_v16, %v3460_v9  ;;  %v1644_v19 = vpop.f32.mrb[66].mxu0 }
 0x1fd   : > { %v1799_v21 = vmax.f32 %v1641_v14, 0.0  ;;  %v1645_v22 = vadd.f32 %v1644_v19, %v3457_v17  ;;  %v1646_v23 = vpop.f32.mrb[67].mxu0 }
 0x1fe   : > { %v1800_v24 = vmax.f32 %v1643_v18, 0.0  ;;  %v1647_v25 = vadd.f32 %v1646_v23, %v3460_v9 }
 0x1ff   : > { %v1801_v26 = vmax.f32 %v1645_v22, 0.0  ;;  %v1875_v27 = vmul.f32 %v3467_v7, %v1799_v21 }
 0x200   : > { %v1802_v28 = vmax.f32 %v1647_v25, 0.0  ;;  %v1876_v11 = vmul.f32 %v3471_v20, %v1800_v24 }
 0x201   : > { %v1877_v29 = vmul.f32 %v3467_v7, %v1801_v26 }
 0x202   : > { %v1878_v30 = vmul.f32 %v3471_v20, %v1802_v28  ;;  %v1650_v31 = vpop.f32.mrb[68].mxu0  ;;  %v1939_v13 = vadd.f32 %v1876_v11, %v1875_v27 }
 0x203   : > { %v1651_v32 = vadd.f32 %v1650_v31, %v3457_v17  ;;  %v1652_v33 = vpop.f32.mrb[69].mxu0 }
 0x204   : > { %v1653_v34 = vadd.f32 %v1652_v33, %v3460_v9  ;;  %v1654_v35 = vpop.f32.mrb[70].mxu0  ;;  %1940 = vadd.xlane.f32.xlu0 %v1939_v13  ;;  %v1942_v36 = vadd.f32 %v1878_v30, %v1877_v29 }
 0x205   : > { %v1803_v37 = vmax.f32 %v1651_v32, 0.0  ;;  %v1655_v38 = vadd.f32 %v1654_v35, %v3457_v17  ;;  %v1656_v39 = vpop.f32.mrb[71].mxu0 }
 0x206   : > { %v1804_v40 = vmax.f32 %v1653_v34, 0.0  ;;  %v1657_v41 = vadd.f32 %v1656_v39, %v3460_v9 }
 0x207   : > { %v1805_v42 = vmax.f32 %v1655_v38, 0.0  ;;  %v1879_v43 = vmul.f32 %v3467_v7, %v1803_v37 }
 0x208   : > { %v1806_v44 = vmax.f32 %v1657_v41, 0.0  ;;  %1943 = vadd.xlane.f32.xlu0 %v1942_v36  ;;  %v1880_v45 = vmul.f32 %v3471_v20, %v1804_v40 }
 0x209   : > { %v1881_v46 = vmul.f32 %v3467_v7, %v1805_v42 }
 0x20a   : > { %v1882_v47 = vmul.f32 %v3471_v20, %v1806_v44  ;;  %v1660_v48 = vpop.f32.mrb[72].mxu0  ;;  %v1945_v49 = vadd.f32 %v1880_v45, %v1879_v43 }
 0x20b   : > { %v1661_v50 = vadd.f32 %v1660_v48, %v3457_v17  ;;  %v1662_v51 = vpop.f32.mrb[73].mxu0 }
 0x20c   : > { %v1663_v52 = vadd.f32 %v1662_v51, %v3460_v9  ;;  %v1664_v53 = vpop.f32.mrb[74].mxu0  ;;  %1946 = vadd.xlane.f32.xlu1 %v1945_v49  ;;  %v1948_v54 = vadd.f32 %v1882_v47, %v1881_v46 }
 0x20d   : > { %v1807_v55 = vmax.f32 %v1661_v50, 0.0  ;;  %v1665_v56 = vadd.f32 %v1664_v53, %v3457_v17  ;;  %v1666_v57 = vpop.f32.mrb[75].mxu0 }
 0x20e   : > { %v1808_v58 = vmax.f32 %v1663_v52, 0.0  ;;  %v1667_v59 = vadd.f32 %v1666_v57, %v3460_v9 }
 0x20f   : > { %v1883_v60 = vmul.f32 %v3467_v7, %v1807_v55  ;;  %v1809_v61 = vmax.f32 %v1665_v56, 0.0 }
 0x210   : > { %v1884_v62 = vmul.f32 %v3471_v20, %v1808_v58  ;;  %v1810_v63 = vmax.f32 %v1667_v59, 0.0  ;;  %1949 = vadd.xlane.f32.xlu1 %v1948_v54 }
 0x211   : > { %v1885_v0 = vmul.f32 %v3467_v7, %v1809_v61 }
 0x212   : > { %v1886_v2 = vmul.f32 %v3471_v20, %v1810_v63  ;;  %v1670_v3 = vpop.f32.mrb[0].mxu1  ;;  %v1951_v4 = vadd.f32 %v1884_v62, %v1883_v60 }
 0x213   : > { %v1671_v5 = vadd.f32 %v1670_v3, %v3457_v17  ;;  %v1672_v6 = vpop.f32.mrb[1].mxu1 }
 0x214   : > { %v1673_v8 = vadd.f32 %v1672_v6, %v3460_v9  ;;  %v1674_v15 = vpop.f32.mrb[2].mxu1  ;;  %1952 = vadd.xlane.f32.xlu0 %v1951_v4  ;;  %v1954_v1 = vadd.f32 %v1886_v2, %v1885_v0 }
 0x215   : > { %v1811_v10 = vmax.f32 %v1671_v5, 0.0  ;;  %v1675_v12 = vadd.f32 %v1674_v15, %v3457_v17  ;;  %v1676_v14 = vpop.f32.mrb[3].mxu1 }
 0x216   : > { %v1812_v16 = vmax.f32 %v1673_v8, 0.0  ;;  %v1677_v18 = vadd.f32 %v1676_v14, %v3460_v9  ;;  %1955 = vadd.xlane.f32.xlu1 %v1954_v1 }
 0x217   : > { %v1887_v19 = vmul.f32 %v3467_v7, %v1811_v10  ;;  %v1813_v21 = vmax.f32 %v1675_v12, 0.0 }
 0x218   : > { %v1888_v22 = vmul.f32 %v3471_v20, %v1812_v16  ;;  %v1814_v23 = vmax.f32 %v1677_v18, 0.0 }
 0x219   : > { %v1889_v24 = vmul.f32 %v3467_v7, %v1813_v21 }
 0x21a   : > { %v1890_v25 = vmul.f32 %v3471_v20, %v1814_v23  ;;  %v1680_v26 = vpop.f32.mrb[4].mxu1  ;;  %v1957_v27 = vadd.f32 %v1888_v22, %v1887_v19 }
 0x21b   : > { %v1681_v28 = vadd.f32 %v1680_v26, %v3457_v17  ;;  %v1682_v11 = vpop.f32.mrb[5].mxu1 }
 0x21c   : > { %v1683_v29 = vadd.f32 %v1682_v11, %v3460_v9  ;;  %v1684_v30 = vpop.f32.mrb[6].mxu1  ;;  %1958 = vadd.xlane.f32.xlu0 %v1957_v27  ;;  %v1960_v31 = vadd.f32 %v1890_v25, %v1889_v24 }
 0x21d   : > { %v1815_v13 = vmax.f32 %v1681_v28, 0.0  ;;  %v1685_v32 = vadd.f32 %v1684_v30, %v3457_v17  ;;  %v1686_v33 = vpop.f32.mrb[7].mxu1 }
 0x21e   : > { %v1816_v34 = vmax.f32 %v1683_v29, 0.0  ;;  %v1687_v35 = vadd.f32 %v1686_v33, %v3460_v9  ;;  %1961 = vadd.xlane.f32.xlu1 %v1960_v31 }
 0x21f   : > { %v1891_v36 = vmul.f32 %v3467_v7, %v1815_v13  ;;  %v1817_v37 = vmax.f32 %v1685_v32, 0.0 }
 0x220   : > { %v1892_v38 = vmul.f32 %v3471_v20, %v1816_v34  ;;  %v1818_v39 = vmax.f32 %v1687_v35, 0.0 }
 0x221   : > { %v1893_v40 = vmul.f32 %v3467_v7, %v1817_v37 }
 0x222   : > { %v1894_v41 = vmul.f32 %v3471_v20, %v1818_v39  ;;  %v1690_v42 = vpop.f32.mrb[8].mxu1  ;;  %v1963_v43 = vadd.f32 %v1892_v38, %v1891_v36 }
 0x223   : > { %v1691_v44 = vadd.f32 %v1690_v42, %v3457_v17  ;;  %v1692_v45 = vpop.f32.mrb[9].mxu1 }
 0x224   : > { %v1693_v46 = vadd.f32 %v1692_v45, %v3460_v9  ;;  %v1694_v47 = vpop.f32.mrb[10].mxu1  ;;  %1964 = vadd.xlane.f32.xlu0 %v1963_v43  ;;  %v1966_v48 = vadd.f32 %v1894_v41, %v1893_v40 }
 0x225   : > { %v1819_v49 = vmax.f32 %v1691_v44, 0.0  ;;  %v1695_v50 = vadd.f32 %v1694_v47, %v3457_v17  ;;  %v1696_v51 = vpop.f32.mrb[11].mxu1 }
 0x226   : > { %v1820_v52 = vmax.f32 %v1693_v46, 0.0  ;;  %v1697_v53 = vadd.f32 %v1696_v51, %v3460_v9  ;;  %1967 = vadd.xlane.f32.xlu1 %v1966_v48 }
 0x227   : > { %v1895_v54 = vmul.f32 %v3467_v7, %v1819_v49  ;;  %v1821_v55 = vmax.f32 %v1695_v50, 0.0 }
 0x228   : > { %v1896_v56 = vmul.f32 %v3471_v20, %v1820_v52  ;;  %v1822_v57 = vmax.f32 %v1697_v53, 0.0 }
 0x229   : > { %v1897_v58 = vmul.f32 %v3467_v7, %v1821_v55 }
 0x22a   : > { %v1898_v59 = vmul.f32 %v3471_v20, %v1822_v57  ;;  %v1700_v60 = vpop.f32.mrb[12].mxu1  ;;  %v1969_v61 = vadd.f32 %v1896_v56, %v1895_v54 }
 0x22b   : > { %v1701_v62 = vadd.f32 %v1700_v60, %v3457_v17  ;;  %v1702_v63 = vpop.f32.mrb[13].mxu1 }
 0x22c   : > { %v1703_v0 = vadd.f32 %v1702_v63, %v3460_v9  ;;  %v1704_v2 = vpop.f32.mrb[14].mxu1  ;;  %1970 = vadd.xlane.f32.xlu0 %v1969_v61  ;;  %v1972_v3 = vadd.f32 %v1898_v59, %v1897_v58 }
 0x22d   : > { %v1823_v4 = vmax.f32 %v1701_v62, 0.0  ;;  %v1705_v5 = vadd.f32 %v1704_v2, %v3457_v17  ;;  %v1706_v6 = vpop.f32.mrb[15].mxu1 }
 0x22e   : > { %v1824_v8 = vmax.f32 %v1703_v0, 0.0  ;;  %v1707_v15 = vadd.f32 %v1706_v6, %v3460_v9  ;;  %1973 = vadd.xlane.f32.xlu1 %v1972_v3 }
 0x22f   : > { %v1899_v1 = vmul.f32 %v3467_v7, %v1823_v4  ;;  %v1825_v10 = vmax.f32 %v1705_v5, 0.0 }
 0x230   : > { %v1900_v12 = vmul.f32 %v3471_v20, %v1824_v8  ;;  %v1826_v14 = vmax.f32 %v1707_v15, 0.0 }
 0x231   : > { %v1901_v16 = vmul.f32 %v3467_v7, %v1825_v10 }
 0x232   : > { %v1902_v18 = vmul.f32 %v3471_v20, %v1826_v14  ;;  %v1710_v19 = vpop.f32.mrb[16].mxu1  ;;  %v1975_v21 = vadd.f32 %v1900_v12, %v1899_v1 }
 0x233   : > { %v1711_v22 = vadd.f32 %v1710_v19, %v3457_v17  ;;  %v1712_v23 = vpop.f32.mrb[17].mxu1 }
 0x234   : > { %v1713_v24 = vadd.f32 %v1712_v23, %v3460_v9  ;;  %v1714_v25 = vpop.f32.mrb[18].mxu1  ;;  %1976 = vadd.xlane.f32.xlu0 %v1975_v21  ;;  %v1978_v26 = vadd.f32 %v1902_v18, %v1901_v16 }
 0x235   : > { %v1827_v27 = vmax.f32 %v1711_v22, 0.0  ;;  %v1715_v28 = vadd.f32 %v1714_v25, %v3457_v17  ;;  %v1716_v11 = vpop.f32.mrb[19].mxu1 }
 0x236   : > { %v1828_v29 = vmax.f32 %v1713_v24, 0.0  ;;  %v1717_v30 = vadd.f32 %v1716_v11, %v3460_v9  ;;  %1979 = vadd.xlane.f32.xlu1 %v1978_v26 }
 0x237   : > { %v1903_v31 = vmul.f32 %v3467_v7, %v1827_v27  ;;  %v1829_v13 = vmax.f32 %v1715_v28, 0.0 }
 0x238   : > { %v1904_v32 = vmul.f32 %v3471_v20, %v1828_v29  ;;  %v1830_v33 = vmax.f32 %v1717_v30, 0.0 }
 0x239   : > { %v1905_v34 = vmul.f32 %v3467_v7, %v1829_v13 }
 0x23a   : > { %v1906_v35 = vmul.f32 %v3471_v20, %v1830_v33  ;;  %v1720_v36 = vpop.f32.mrb[20].mxu1  ;;  %v1981_v37 = vadd.f32 %v1904_v32, %v1903_v31 }
 0x23b   : > { %v1721_v38 = vadd.f32 %v1720_v36, %v3457_v17  ;;  %v1722_v39 = vpop.f32.mrb[21].mxu1 }
 0x23c   : > { %v1723_v40 = vadd.f32 %v1722_v39, %v3460_v9  ;;  %v1724_v41 = vpop.f32.mrb[22].mxu1  ;;  %1982 = vadd.xlane.f32.xlu0 %v1981_v37  ;;  %v1984_v42 = vadd.f32 %v1906_v35, %v1905_v34 }
 0x23d   : > { %v1831_v43 = vmax.f32 %v1721_v38, 0.0  ;;  %v1725_v44 = vadd.f32 %v1724_v41, %v3457_v17  ;;  %v1726_v45 = vpop.f32.mrb[23].mxu1 }
 0x23e   : > { %v1832_v46 = vmax.f32 %v1723_v40, 0.0  ;;  %v1727_v47 = vadd.f32 %v1726_v45, %v3460_v9  ;;  %1985 = vadd.xlane.f32.xlu1 %v1984_v42 }
 0x23f   : > { %v1907_v48 = vmul.f32 %v3467_v7, %v1831_v43  ;;  %v1833_v49 = vmax.f32 %v1725_v44, 0.0 }
 0x240   : > { %v1908_v50 = vmul.f32 %v3471_v20, %v1832_v46  ;;  %v1834_v51 = vmax.f32 %v1727_v47, 0.0 }
 0x241   : > { %v1909_v52 = vmul.f32 %v3467_v7, %v1833_v49 }
 0x242   : > { %v1910_v53 = vmul.f32 %v3471_v20, %v1834_v51  ;;  %v1730_v54 = vpop.f32.mrb[24].mxu1  ;;  %v1987_v55 = vadd.f32 %v1908_v50, %v1907_v48 }
 0x243   : > { %v1731_v56 = vadd.f32 %v1730_v54, %v3457_v17  ;;  %v1732_v57 = vpop.f32.mrb[25].mxu1 }
 0x244   : > { %v1733_v58 = vadd.f32 %v1732_v57, %v3460_v9  ;;  %v1734_v59 = vpop.f32.mrb[26].mxu1  ;;  %1988 = vadd.xlane.f32.xlu0 %v1987_v55  ;;  %v1990_v60 = vadd.f32 %v1910_v53, %v1909_v52 }
 0x245   : > { %v1835_v61 = vmax.f32 %v1731_v56, 0.0  ;;  %v1735_v62 = vadd.f32 %v1734_v59, %v3457_v17  ;;  %v1736_v63 = vpop.f32.mrb[27].mxu1 }
 0x246   : > { %v1836_v0 = vmax.f32 %v1733_v58, 0.0  ;;  %v1737_v2 = vadd.f32 %v1736_v63, %v3460_v9  ;;  %1991 = vadd.xlane.f32.xlu1 %v1990_v60 }
 0x247   : > { %v1911_v3 = vmul.f32 %v3467_v7, %v1835_v61  ;;  %v1837_v4 = vmax.f32 %v1735_v62, 0.0 }
 0x248   : > { %v1912_v5 = vmul.f32 %v3471_v20, %v1836_v0  ;;  %v1838_v6 = vmax.f32 %v1737_v2, 0.0 }
 0x249   : > { %v1913_v8 = vmul.f32 %v3467_v7, %v1837_v4 }
 0x24a   : > { %v1914_v15 = vmul.f32 %v3471_v20, %v1838_v6  ;;  %v1740_v1 = vpop.f32.mrb[28].mxu1  ;;  %v1993_v10 = vadd.f32 %v1912_v5, %v1911_v3 }
 0x24b   : > { %v1741_v12 = vadd.f32 %v1740_v1, %v3457_v17  ;;  %v1742_v14 = vpop.f32.mrb[29].mxu1 }
 0x24c   : > { %v1743_v16 = vadd.f32 %v1742_v14, %v3460_v9  ;;  %v1744_v18 = vpop.f32.mrb[30].mxu1  ;;  %1994 = vadd.xlane.f32.xlu0 %v1993_v10  ;;  %v1996_v19 = vadd.f32 %v1914_v15, %v1913_v8 }
 0x24d   : > { %v1839_v21 = vmax.f32 %v1741_v12, 0.0  ;;  %v1745_v22 = vadd.f32 %v1744_v18, %v3457_v17  ;;  %v1746_v23 = vpop.f32.mrb[31].mxu1 }
 0x24e   : > { %v1840_v24 = vmax.f32 %v1743_v16, 0.0  ;;  %v1747_v25 = vadd.f32 %v1746_v23, %v3460_v9  ;;  %1997 = vadd.xlane.f32.xlu1 %v1996_v19 }
 0x24f   : > { %v1915_v26 = vmul.f32 %v3467_v7, %v1839_v21  ;;  %v1841_v27 = vmax.f32 %v1745_v22, 0.0 }
 0x250   : > { %v1916_v28 = vmul.f32 %v3471_v20, %v1840_v24  ;;  %v1842_v11 = vmax.f32 %v1747_v25, 0.0 }
 0x251   : > { %v1917_v29 = vmul.f32 %v3467_v7, %v1841_v27 }
 0x252   : > { %v1918_v30 = vmul.f32 %v3471_v20, %v1842_v11  ;;  %v1750_v31 = vpop.f32.mrb[32].mxu1  ;;  %v1999_v13 = vadd.f32 %v1916_v28, %v1915_v26 }
 0x253   : > { %v1751_v32 = vadd.f32 %v1750_v31, %v3457_v17  ;;  %v1752_v33 = vpop.f32.mrb[33].mxu1 }
 0x254   : > { %v1753_v34 = vadd.f32 %v1752_v33, %v3460_v9  ;;  %v1754_v35 = vpop.f32.mrb[34].mxu1  ;;  %2000 = vadd.xlane.f32.xlu0 %v1999_v13  ;;  %v2002_v36 = vadd.f32 %v1918_v30, %v1917_v29 }
 0x255   : > { %v1843_v37 = vmax.f32 %v1751_v32, 0.0  ;;  %v1755_v38 = vadd.f32 %v1754_v35, %v3457_v17  ;;  %v1756_v39 = vpop.f32.mrb[35].mxu1 }
 0x256   : > { %v1844_v40 = vmax.f32 %v1753_v34, 0.0  ;;  %v1757_v41 = vadd.f32 %v1756_v39, %v3460_v9  ;;  %2003 = vadd.xlane.f32.xlu1 %v2002_v36 }
 0x257   : > { %v1919_v42 = vmul.f32 %v3467_v7, %v1843_v37  ;;  %v1845_v43 = vmax.f32 %v1755_v38, 0.0 }
 0x258   : > { %v1920_v44 = vmul.f32 %v3471_v20, %v1844_v40  ;;  %v1846_v45 = vmax.f32 %v1757_v41, 0.0 }
 0x259   : > { %v1921_v46 = vmul.f32 %v3467_v7, %v1845_v43 }
 0x25a   : > { %v1922_v47 = vmul.f32 %v3471_v20, %v1846_v45  ;;  %v1760_v48 = vpop.f32.mrb[36].mxu1  ;;  %v2005_v49 = vadd.f32 %v1920_v44, %v1919_v42 }
 0x25b   : > { %v1761_v50 = vadd.f32 %v1760_v48, %v3457_v17  ;;  %v1762_v51 = vpop.f32.mrb[37].mxu1 }
 0x25c   : > { %v1763_v52 = vadd.f32 %v1762_v51, %v3460_v9  ;;  %v1764_v53 = vpop.f32.mrb[38].mxu1  ;;  %2006 = vadd.xlane.f32.xlu0 %v2005_v49  ;;  %v2008_v54 = vadd.f32 %v1922_v47, %v1921_v46 }
 0x25d   : > { %v1847_v55 = vmax.f32 %v1761_v50, 0.0  ;;  %v1765_v56 = vadd.f32 %v1764_v53, %v3457_v17  ;;  %v1766_v57 = vpop.f32.mrb[39].mxu1 }
 0x25e   : > { %v1848_v58 = vmax.f32 %v1763_v52, 0.0  ;;  %v1767_v59 = vadd.f32 %v1766_v57, %v3460_v9  ;;  %2009 = vadd.xlane.f32.xlu1 %v2008_v54 }
 0x25f   : > { %v1923_v60 = vmul.f32 %v3467_v7, %v1847_v55  ;;  %v1849_v61 = vmax.f32 %v1765_v56, 0.0 }
 0x260   : > { %v1924_v62 = vmul.f32 %v3471_v20, %v1848_v58  ;;  %v1850_v63 = vmax.f32 %v1767_v59, 0.0 }
 0x261   : > { %v1925_v0 = vmul.f32 %v3467_v7, %v1849_v61 }
 0x262   : > { %v1926_v2 = vmul.f32 %v3471_v20, %v1850_v63  ;;  %v1770_v3 = vpop.f32.mrb[40].mxu1  ;;  %v2011_v4 = vadd.f32 %v1924_v62, %v1923_v60 }
 0x263   : > { %v1771_v5 = vadd.f32 %v1770_v3, %v3457_v17  ;;  %v1772_v6 = vpop.f32.mrb[41].mxu1 }
 0x264   : > { %v1773_v8 = vadd.f32 %v1772_v6, %v3460_v9  ;;  %v1774_v15 = vpop.f32.mrb[42].mxu1  ;;  %2012 = vadd.xlane.f32.xlu0 %v2011_v4  ;;  %v2014_v1 = vadd.f32 %v1926_v2, %v1925_v0 }
 0x265   : > { %v1851_v10 = vmax.f32 %v1771_v5, 0.0  ;;  %v1775_v12 = vadd.f32 %v1774_v15, %v3457_v17  ;;  %v1776_v14 = vpop.f32.mrb[43].mxu1 }
 0x266   : > { %v1852_v16 = vmax.f32 %v1773_v8, 0.0  ;;  %v1777_v18 = vadd.f32 %v1776_v14, %v3460_v9  ;;  %2015 = vadd.xlane.f32.xlu1 %v2014_v1 }
 0x267   : > { %v1927_v19 = vmul.f32 %v3467_v7, %v1851_v10  ;;  %v1853_v21 = vmax.f32 %v1775_v12, 0.0 }
 0x268   : > { %v1928_v22 = vmul.f32 %v3471_v20, %v1852_v16  ;;  %v1854_v23 = vmax.f32 %v1777_v18, 0.0 }
 0x269   : > { %v1929_v24 = vmul.f32 %v3467_v7, %v1853_v21 }
 0x26a   : > { %v1930_v25 = vmul.f32 %v3471_v20, %v1854_v23  ;;  %v1780_v26 = vpop.f32.mrb[44].mxu1  ;;  %v2017_v27 = vadd.f32 %v1928_v22, %v1927_v19 }
 0x26b   : > { %v1781_v28 = vadd.f32 %v1780_v26, %v3457_v17  ;;  %v1782_v11 = vpop.f32.mrb[45].mxu1 }
 0x26c   : > { %v1783_v29 = vadd.f32 %v1782_v11, %v3460_v9  ;;  %v1784_v30 = vpop.f32.mrb[46].mxu1  ;;  %2018 = vadd.xlane.f32.xlu0 %v2017_v27  ;;  %v2020_v31 = vadd.f32 %v1930_v25, %v1929_v24 }
 0x26d   : > { %v1855_v13 = vmax.f32 %v1781_v28, 0.0  ;;  %v1785_v32 = vadd.f32 %v1784_v30, %v3457_v17  ;;  %v1786_v33 = vpop.f32.mrb[47].mxu1 }
 0x26e   : > { %v1856_v34 = vmax.f32 %v1783_v29, 0.0  ;;  %v1787_v35 = vadd.f32 %v1786_v33, %v3460_v9  ;;  %2021 = vadd.xlane.f32.xlu1 %v2020_v31 }
 0x26f   : > { %v1931_v36 = vmul.f32 %v3467_v7, %v1855_v13  ;;  %v1857_v37 = vmax.f32 %v1785_v32, 0.0 }
 0x270   : > { %v1932_v38 = vmul.f32 %v3471_v20, %v1856_v34  ;;  %v1858_v39 = vmax.f32 %v1787_v35, 0.0 }
 0x271   : > { %v1933_v40 = vmul.f32 %v3467_v7, %v1857_v37 }
 0x272   : > { %v1934_v41 = vmul.f32 %v3471_v20, %v1858_v39  ;;  %v1790_v42 = vpop.f32.mrb[48].mxu1  ;;  %v2023_v43 = vadd.f32 %v1932_v38, %v1931_v36 }
 0x273   : > { %v1791_v44 = vadd.f32 %v1790_v42, %v3457_v17  ;;  %v1792_v45 = vpop.f32.mrb[49].mxu1 }
 0x274   : > { %v1793_v46 = vadd.f32 %v1792_v45, %v3460_v9  ;;  %v1794_v47 = vpop.f32.mrb[50].mxu1  ;;  %2024 = vadd.xlane.f32.xlu0 %v2023_v43  ;;  %v2026_v48 = vadd.f32 %v1934_v41, %v1933_v40 }
 0x275   : > { %v1859_v49 = vmax.f32 %v1791_v44, 0.0  ;;  %v1795_v50 = vadd.f32 %v1794_v47, %v3457_v17  ;;  %v1796_v51 = vpop.f32.mrb[51].mxu1 }
 0x276   : > { %v1860_v52 = vmax.f32 %v1793_v46, 0.0  ;;  %v1797_v53 = vadd.f32 %v1796_v51, %v3460_v9  ;;  %2027 = vadd.xlane.f32.xlu1 %v2026_v48  ;;  %v3608_v9 = vld [vmem:[#allocation2] ss:$0 sm:$0xff] }
 0x277   : > { %v1935_v54 = vmul.f32 %v3467_v7, %v1859_v49  ;;  %v1861_v55 = vmax.f32 %v1795_v50, 0.0 }
 0x278   : > { %v1936_v56 = vmul.f32 %v3471_v20, %v1860_v52  ;;  %v1862_v57 = vmax.f32 %v1797_v53, 0.0 }
 0x279   : > { %v1937_v58 = vmul.f32 %v3467_v7, %v1861_v55 }
 0x27a   : > { %v1938_v59 = vmul.f32 %v3471_v20, %v1862_v57  ;;  %v2029_v60 = vadd.f32 %v1936_v56, %v1935_v54 }
 0x27c   : > { %2030 = vadd.xlane.f32.xlu0 %v2029_v60  ;;  %v2032_v17 = vadd.f32 %v1938_v59, %v1937_v58 }
 0x27e   : > { %2033 = vadd.xlane.f32.xlu1 %v2032_v17 }
 0x27f   : > { %2573 = shalt.err (!%p2570_p4)
}
 0x280   : > { %s2574_s18 = scalar_lea.hbm %s3604_s25, 8192  ;;  %s2578_s1 = scalar_lea.hbm %s3764_s9, 16384 }
 0x281   : > { %p2575_p5 = scmp.ne.s32.totalorder %s3604_s25, %s2574_s18  ;;  %p2579_p1 = scmp.lt.u32.totalorder %s3604_s25, %s3764_s9 }
 0x282   : > { %p2580_p3 = scmp.lt.u32.totalorder %s2578_s1, %s2574_s18  ;;  %p2582_p6 = scmp.lt.u32.totalorder %s2574_s18, %s3604_s25 }
 0x283   : > { %p2576_p7 = pnand %p2575_p5, %p3804_p12 }
 0x284   : > { %p2581_p11 = por %p2580_p3, %p2579_p1 }
 0x285   : > { %p2577_p9 = pneg %p2576_p7 }
 0x286   : > { %p2583_p13 = por %p2582_p6, %p2581_p11 }
 0x288   : > { %p2584_p8 = pnand %p2583_p13, %p2577_p9 }
 0x28a   : > { %2587 = shalt.err (!%p2584_p8)
}
 0x28b   : > { %s2634_s19 = smov 256   ;;  %s2635_s7 = smov 16   ;;  %vm2074_vm1 = vcmask 7168  }
 0x28c   : > { %2432 = dma.vmem_to_hbm [thread:$0]  (%p3804_p12), %s3606_s28, 8192, %s3604_s25, %s2113_s20, %s2634_s19, %s2634_s19, %s2635_s7  }
 0x28d   : > { %s3639_s26 = scalar_lea.vmem %s3763_s8, %s2252_s10 }
 0x291   : > { %v1941_v7 = vpop.xlane.xlu0 %1940 }
 0x292   : > { %v2042_v20 = vadd.f32 %v3608_v9, %v1941_v7 }
 0x294   : > { %2075 = vst.msk [vmem:[%s3639_s26] sm:$0xff] %vm2074_vm1, %v2042_v20 }
 0x295   : > { %v1944_v61 = vpop.xlane.xlu0 %1943 }
 0x296   : > { %v2043_v62 = vadd.f32 %v3608_v9, %v1944_v61 }
 0x298   : > { %2076 = vst.msk [vmem:[%s3639_s26 + $0x8] sm:$0xff] %vm2074_vm1, %v2043_v62 }
 0x299   : > { %v1947_v63 = vpop.xlane.xlu1 %1946 }
 0x29a   : > { %v2044_v0 = vadd.f32 %v3608_v9, %v1947_v63 }
 0x29c   : > { %2077 = vst.msk [vmem:[%s3639_s26 + $0x10] sm:$0xff] %vm2074_vm1, %v2044_v0 }
 0x29d   : > { %v1950_v2 = vpop.xlane.xlu1 %1949 }
 0x29e   : > { %v2045_v3 = vadd.f32 %v3608_v9, %v1950_v2 }
 0x2a0   : > { %2078 = vst.msk [vmem:[%s3639_s26 + $0x18] sm:$0xff] %vm2074_vm1, %v2045_v3 }
 0x2a1   : > { %v1953_v4 = vpop.xlane.xlu0 %1952 }
 0x2a2   : > { %v2046_v5 = vadd.f32 %v3608_v9, %v1953_v4 }
 0x2a3   : > { %v1956_v6 = vpop.xlane.xlu1 %1955 }
 0x2a4   : > { %2079 = vst.msk [vmem:[%s3639_s26 + $0x20] sm:$0xff] %vm2074_vm1, %v2046_v5  ;;  %v2047_v8 = vadd.f32 %v3608_v9, %v1956_v6 }
 0x2a6   : > { %2080 = vst.msk [vmem:[%s3639_s26 + $0x28] sm:$0xff] %vm2074_vm1, %v2047_v8 }
 0x2a9   : > { %v1959_v15 = vpop.xlane.xlu0 %1958 }
 0x2aa   : > { %v2048_v1 = vadd.f32 %v3608_v9, %v1959_v15 }
 0x2ab   : > { %v1962_v10 = vpop.xlane.xlu1 %1961 }
 0x2ac   : > { %2081 = vst.msk [vmem:[%s3639_s26 + $0x30] sm:$0xff] %vm2074_vm1, %v2048_v1  ;;  %v2049_v12 = vadd.f32 %v3608_v9, %v1962_v10 }
 0x2ae   : > { %2082 = vst.msk [vmem:[%s3639_s26 + $0x38] sm:$0xff] %vm2074_vm1, %v2049_v12 }
 0x2b1   : > { %v1965_v14 = vpop.xlane.xlu0 %1964 }
 0x2b2   : > { %v2050_v16 = vadd.f32 %v3608_v9, %v1965_v14 }
 0x2b3   : > { %v1968_v18 = vpop.xlane.xlu1 %1967 }
 0x2b4   : > { %2083 = vst.msk [vmem:[%s3639_s26 + $0x40] sm:$0xff] %vm2074_vm1, %v2050_v16  ;;  %v2051_v19 = vadd.f32 %v3608_v9, %v1968_v18 }
 0x2b6   : > { %2084 = vst.msk [vmem:[%s3639_s26 + $0x48] sm:$0xff] %vm2074_vm1, %v2051_v19 }
 0x2b9   : > { %v1971_v21 = vpop.xlane.xlu0 %1970 }
 0x2ba   : > { %v2052_v22 = vadd.f32 %v3608_v9, %v1971_v21 }
 0x2bb   : > { %v1974_v23 = vpop.xlane.xlu1 %1973 }
 0x2bc   : > { %2085 = vst.msk [vmem:[%s3639_s26 + $0x50] sm:$0xff] %vm2074_vm1, %v2052_v22  ;;  %v2053_v24 = vadd.f32 %v3608_v9, %v1974_v23 }
 0x2be   : > { %2086 = vst.msk [vmem:[%s3639_s26 + $0x58] sm:$0xff] %vm2074_vm1, %v2053_v24 }
 0x2c1   : > { %v1977_v25 = vpop.xlane.xlu0 %1976 }
 0x2c2   : > { %v2054_v26 = vadd.f32 %v3608_v9, %v1977_v25 }
 0x2c3   : > { %v1980_v27 = vpop.xlane.xlu1 %1979 }
 0x2c4   : > { %2087 = vst.msk [vmem:[%s3639_s26 + $0x60] sm:$0xff] %vm2074_vm1, %v2054_v26  ;;  %v2055_v28 = vadd.f32 %v3608_v9, %v1980_v27 }
 0x2c6   : > { %2088 = vst.msk [vmem:[%s3639_s26 + $0x68] sm:$0xff] %vm2074_vm1, %v2055_v28 }
 0x2c9   : > { %v1983_v11 = vpop.xlane.xlu0 %1982 }
 0x2ca   : > { %v2056_v29 = vadd.f32 %v3608_v9, %v1983_v11 }
 0x2cb   : > { %v1986_v30 = vpop.xlane.xlu1 %1985 }
 0x2cc   : > { %2089 = vst.msk [vmem:[%s3639_s26 + $0x70] sm:$0xff] %vm2074_vm1, %v2056_v29  ;;  %v2057_v31 = vadd.f32 %v3608_v9, %v1986_v30 }
 0x2ce   : > { %2090 = vst.msk [vmem:[%s3639_s26 + $0x78] sm:$0xff] %vm2074_vm1, %v2057_v31 }
 0x2d1   : > { %v1989_v13 = vpop.xlane.xlu0 %1988 }
 0x2d2   : > { %v2058_v32 = vadd.f32 %v3608_v9, %v1989_v13 }
 0x2d3   : > { %v1992_v33 = vpop.xlane.xlu1 %1991 }
 0x2d4   : > { %2091 = vst.msk [vmem:[%s3639_s26 + $0x80] sm:$0xff] %vm2074_vm1, %v2058_v32  ;;  %v2059_v34 = vadd.f32 %v3608_v9, %v1992_v33 }
 0x2d6   : > { %2092 = vst.msk [vmem:[%s3639_s26 + $0x88] sm:$0xff] %vm2074_vm1, %v2059_v34 }
 0x2d9   : > { %v1995_v35 = vpop.xlane.xlu0 %1994 }
 0x2da   : > { %v2060_v36 = vadd.f32 %v3608_v9, %v1995_v35 }
 0x2db   : > { %v1998_v37 = vpop.xlane.xlu1 %1997 }
 0x2dc   : > { %2093 = vst.msk [vmem:[%s3639_s26 + $0x90] sm:$0xff] %vm2074_vm1, %v2060_v36  ;;  %v2061_v38 = vadd.f32 %v3608_v9, %v1998_v37 }
 0x2de   : > { %2094 = vst.msk [vmem:[%s3639_s26 + $0x98] sm:$0xff] %vm2074_vm1, %v2061_v38 }
 0x2e1   : > { %v2001_v39 = vpop.xlane.xlu0 %2000 }
 0x2e2   : > { %v2062_v40 = vadd.f32 %v3608_v9, %v2001_v39 }
 0x2e3   : > { %v2004_v41 = vpop.xlane.xlu1 %2003 }
 0x2e4   : > { %2095 = vst.msk [vmem:[%s3639_s26 + $0xa0] sm:$0xff] %vm2074_vm1, %v2062_v40  ;;  %v2063_v42 = vadd.f32 %v3608_v9, %v2004_v41 }
 0x2e6   : > { %2096 = vst.msk [vmem:[%s3639_s26 + $0xa8] sm:$0xff] %vm2074_vm1, %v2063_v42 }
 0x2e9   : > { %v2007_v43 = vpop.xlane.xlu0 %2006 }
 0x2ea   : > { %v2064_v44 = vadd.f32 %v3608_v9, %v2007_v43 }
 0x2eb   : > { %v2010_v45 = vpop.xlane.xlu1 %2009 }
 0x2ec   : > { %2097 = vst.msk [vmem:[%s3639_s26 + $0xb0] sm:$0xff] %vm2074_vm1, %v2064_v44  ;;  %v2065_v46 = vadd.f32 %v3608_v9, %v2010_v45 }
 0x2ee   : > { %2098 = vst.msk [vmem:[%s3639_s26 + $0xb8] sm:$0xff] %vm2074_vm1, %v2065_v46 }
 0x2f1   : > { %v2013_v47 = vpop.xlane.xlu0 %2012 }
 0x2f2   : > { %v2066_v48 = vadd.f32 %v3608_v9, %v2013_v47 }
 0x2f3   : > { %v2016_v49 = vpop.xlane.xlu1 %2015 }
 0x2f4   : > { %2099 = vst.msk [vmem:[%s3639_s26 + $0xc0] sm:$0xff] %vm2074_vm1, %v2066_v48  ;;  %v2067_v50 = vadd.f32 %v3608_v9, %v2016_v49 }
 0x2f6   : > { %2100 = vst.msk [vmem:[%s3639_s26 + $0xc8] sm:$0xff] %vm2074_vm1, %v2067_v50 }
 0x2f9   : > { %v2019_v51 = vpop.xlane.xlu0 %2018 }
 0x2fa   : > { %v2068_v52 = vadd.f32 %v3608_v9, %v2019_v51 }
 0x2fb   : > { %v2022_v53 = vpop.xlane.xlu1 %2021 }
 0x2fc   : > { %2101 = vst.msk [vmem:[%s3639_s26 + $0xd0] sm:$0xff] %vm2074_vm1, %v2068_v52  ;;  %v2069_v54 = vadd.f32 %v3608_v9, %v2022_v53 }
 0x2fe   : > { %2102 = vst.msk [vmem:[%s3639_s26 + $0xd8] sm:$0xff] %vm2074_vm1, %v2069_v54 }
 0x301   : > { %v2025_v55 = vpop.xlane.xlu0 %2024 }
 0x302   : > { %v2070_v56 = vadd.f32 %v3608_v9, %v2025_v55 }
 0x303   : > { %v2028_v57 = vpop.xlane.xlu1 %2027 }
 0x304   : > { %2103 = vst.msk [vmem:[%s3639_s26 + $0xe0] sm:$0xff] %vm2074_vm1, %v2070_v56  ;;  %v2071_v58 = vadd.f32 %v3608_v9, %v2028_v57 }
 0x306   : > { %2104 = vst.msk [vmem:[%s3639_s26 + $0xe8] sm:$0xff] %vm2074_vm1, %v2071_v58 }
 0x309   : > { %v2031_v59 = vpop.xlane.xlu0 %2030 }
 0x30a   : > { %v2072_v60 = vadd.f32 %v3608_v9, %v2031_v59 }
 0x30b   : > { %v2034_v17 = vpop.xlane.xlu1 %2033 }
 0x30c   : > { %2105 = vst.msk [vmem:[%s3639_s26 + $0xf0] sm:$0xff] %vm2074_vm1, %v2072_v60  ;;  %v2073_v7 = vadd.f32 %v3608_v9, %v2034_v17 }
 0x30e   : > { %2106 = vst.msk [vmem:[%s3639_s26 + $0xf8] sm:$0xff] %vm2074_vm1, %v2073_v7 }
 0x30f PF: > { %s2154_s22 = sand.u32 1, %s2614_s11   ;;  %p3805_p12 = scmp.ne.s32.totalorder %s3772_s23, 0 }
 0x310   : > { %p3806_p10 = scmp.ge.s32.totalorder %s2626_s14, 2  ;;  %s2155_s27 = scalar_lea.sflag [#allocation5], %s2154_s22 }
 0x312   : > { %p2439_p0 = pnand %p3806_p10, %p3805_p12 }
 0x314   : > { %2609 = dma.done.wait (!%p2439_p0), %s2155_s27, 8192  }
 0x315   : > { %2611 = vsyncadd (!%p2439_p0), %s2155_s27, 4294959104  ;;  %s3807_s29 = sld [smem:[#allocation9_spill]]  ;;  %p25_p2 = scmp.ge.s32.totalorder %s2714_s16, 4  }
 0x316   : > { %s3808_s11 = smov %s2618_s12  ;;  %s3809_s12 = smov %s2622_s13 }
 0x317   : > { %s3811_s14 = smov %s2714_s16  ;;  %27 = sbr.rel (!%p25_p2) target bundleno = 8 (0x8), region = 112 }
 0x31b   : > { %s3810_s13 = smov %s3807_s29 }
 0x31e   :  { %2160 = vsyncpa [#allocation4], 1 }
 0x31f   :  { %2162 = vsyncpa [#allocation4 + $0x1], 1 }
 0x320   :  { %2163 = vsyncpa [#allocation5], 1 }
 0x321   :  { %2165 = vsyncpa [#allocation5 + $0x1], 1 }

</bundles_post_ra>
